<compile_context>
chip_gen: v5e
topology: v5e:2x2
jax: 0.10.0
libtpu: 0.0.40
codegen_flags: <defaults>
</compile_context>

<pallas_src>
import functools

import jax
import jax.numpy as jnp
from jax.experimental import pallas as pl
from jax.experimental.pallas import tpu as pltpu

_LANE = 128
_EPS2 = 1e-16  # (1e-8)^2 : clamp applied to each squared norm


def _round_up(x, m):
    return (x + m - 1) // m * m


def _cosine_kernel(o_ref, t_ref, cs_ref, dot_acc, so_acc, st_acc, *,
                   tile_n, tile_f, f_total, f_tiles, mask_f):
    k = pl.program_id(1)

    o = o_ref[...].astype(jnp.float32)      # (TILE_N, TILE_F)
    t = t_ref[...].astype(jnp.float32)

    if mask_f:
        # Ragged last F tile: zero out-of-range columns so undefined padded
        # block columns cannot contaminate the row reductions.
        col = k * tile_f + jax.lax.broadcasted_iota(jnp.int32, (tile_n, tile_f), 1)
        valid = col < f_total
        o = jnp.where(valid, o, 0.0)
        t = jnp.where(valid, t, 0.0)

    dot = jnp.sum(o * t, axis=1, keepdims=True)   # (TILE_N, 1)
    so = jnp.sum(o * o, axis=1, keepdims=True)
    st = jnp.sum(t * t, axis=1, keepdims=True)

    def finalize(dot_c, so_c, st_c):
        # 1 / max(||.||, eps) per factor via EUP rsqrt (no f32 overflow of so*st).
        inv = jax.lax.rsqrt(jnp.maximum(so_c, _EPS2)) * jax.lax.rsqrt(
            jnp.maximum(st_c, _EPS2))
        cs_col = dot_c * inv                               # (TILE_N, 1)
        # Lane-dense store: one column->row relayout, wide unmasked stores.
        cs_ref[...] = jnp.reshape(cs_col, (1, tile_n)).astype(cs_ref.dtype)

    if f_tiles == 1:
        # Common case (small/medium F): no accumulator round-trip at all.
        finalize(dot, so, st)
    else:
        @pl.when(k == 0)
        def _():
            dot_acc[...] = jnp.zeros_like(dot_acc)
            so_acc[...] = jnp.zeros_like(so_acc)
            st_acc[...] = jnp.zeros_like(st_acc)

        dot_acc[...] += dot
        so_acc[...] += so
        st_acc[...] += st

        @pl.when(k == f_tiles - 1)
        def _():
            finalize(dot_acc[...], so_acc[...], st_acc[...])


def _vmem_capacity_bytes():
    # Per-TensorCore VMEM: 128 MiB on v5e/v6e, 64 MiB on v7x.
    try:
        return int(pltpu.get_tpu_info().vmem_capacity_bytes)
    except Exception:
        return 64 * 2**20  # conservative fallback (v7x per-TC)


def _vmem_cap(vmem_physical):
    # Scoped-VMEM ceiling we are willing to request: <= 48 MiB and <= 3/4 of
    # physical, leaving headroom for outputs / compiler-internal scratch
    # (critical on v7x where physical VMEM is only 64 MiB per TensorCore).
    return min(48 * 2**20, (vmem_physical * 3) // 4)


def _choose_tiles(n, f, itemsize, vmem_physical):
    """Pick (tile_n, tile_f).  tile_n is a multiple of 128 (or == n); tile_f is
    a multiple of 128 (or == f).  Sized so each grid step moves ~4-8 MiB of
    input bytes and the 4 double-buffered input blocks (layout-padded) stay
    well under the scoped-VMEM cap."""
    sub = max(8, 32 // itemsize)                 # sublane rounding (f32: 8, bf16: 16)
    target_step = 8 * 2**20                      # ~8 MiB of input bytes per grid step
    floor_step = 4 * 2**20                       # never drop below ~4 MiB / step
    in_budget = min(24 * 2**20, _vmem_cap(vmem_physical) - 8 * 2**20)

    # F tiling only when even a minimal 128-row full-F block set blows the budget.
    tile_f = f
    min_full_f = 2 * 2 * _round_up(128, sub) * _round_up(f, _LANE) * itemsize
    if min_full_f > in_budget:
        tile_f = max(_LANE, (target_step // (2 * 256 * itemsize)) // _LANE * _LANE)
        if tile_f >= f:
            tile_f = f

    row_bytes = 2 * _round_up(tile_f, _LANE) * itemsize   # both inputs, one row
    tn_budget = in_budget // (2 * row_bytes)              # 2 inputs x 2 buffers
    tn_hi = min(tn_budget, target_step // row_bytes)
    tn_lo = min(tn_hi, floor_step // row_bytes)
    # Prefer >= ~16 row tiles (8 per v7x TensorCore) without dropping below the
    # per-step byte floor.
    tn = max(tn_lo, min(tn_hi, pl.cdiv(n, 16)))
    tile_n = max(_LANE, (tn // _LANE) * _LANE)
    if tile_n >= n:
        tile_n = n
    return tile_n, tile_f


def cosine_similarity(output, target, *, tile_n=None, tile_f=None):
    """output, target: (N, Features). Returns (cs:(N,), mean_cs:(), std_cs:())."""
    assert output.shape == target.shape and output.ndim == 2
    n, f = output.shape
    itemsize = jnp.dtype(output.dtype).itemsize
    vmem_physical = _vmem_capacity_bytes()

    auto_n, auto_f = _choose_tiles(n, f, itemsize, vmem_physical)
    if tile_n is None:
        tile_n = auto_n
    if tile_f is None:
        tile_f = auto_f

    if tile_n >= n:
        tile_n = n
    else:
        assert tile_n % _LANE == 0, "tile_n must be a multiple of 128 (or >= N)"
    if tile_f >= f:
        tile_f = f
    else:
        assert tile_f % _LANE == 0, "tile_f must be a multiple of 128 (or >= F)"

    num_n = pl.cdiv(n, tile_n)
    num_f = pl.cdiv(f, tile_f)
    mask_f = (tile_f < f) and (f % tile_f != 0)

    # Layout-padded VMEM accounting: inputs (x2 buffers), resident cs block (x2),
    # three (TILE_N, 1) f32 accumulator columns.
    sub = max(8, 32 // itemsize)
    in_block = _round_up(tile_n, sub) * _round_up(tile_f, _LANE) * itemsize
    cs_block = 8 * _round_up(tile_n, _LANE) * 4
    acc_bytes = 3 * _round_up(tile_n, 8) * _LANE * 4
    est_vmem = 2 * 2 * in_block + 2 * cs_block + acc_bytes
    vmem_limit = int(min(_vmem_cap(vmem_physical),
                         max(16 * 2**20, est_vmem + 8 * 2**20)))

    kernel = functools.partial(
        _cosine_kernel, tile_n=tile_n, tile_f=tile_f, f_total=f,
        f_tiles=num_f, mask_f=mask_f)

    cs_row = pl.pallas_call(
        kernel,
        out_shape=jax.ShapeDtypeStruct((1, n), jnp.float32),   # lane-dense cs
        grid=(num_n, num_f),
        in_specs=[
            pl.BlockSpec((tile_n, tile_f), lambda i, k: (i, k)),
            pl.BlockSpec((tile_n, tile_f), lambda i, k: (i, k)),
        ],
        out_specs=pl.BlockSpec((1, tile_n), lambda i, k: (0, i)),
        scratch_shapes=[
            pltpu.VMEM((tile_n, 1), jnp.float32),   # dot accumulator
            pltpu.VMEM((tile_n, 1), jnp.float32),   # ||o||^2 accumulator
            pltpu.VMEM((tile_n, 1), jnp.float32),   # ||t||^2 accumulator
        ],
        compiler_params=pltpu.CompilerParams(
            dimension_semantics=("parallel", "arbitrary"),
            vmem_limit_bytes=vmem_limit,
        ),
    )(output, target)

    cs = cs_row[0]

    # Finalize statistics in XLA directly from cs (~4N bytes, negligible vs the
    # kernel's 2*N*F*itemsize of HBM traffic).
    mean = jnp.mean(cs)
    # torch.std default: unbiased (correction=1); NaN for N == 1 (0/0), like torch.
    std = jnp.sqrt(jnp.sum((cs - mean) ** 2) / jnp.float32(n - 1))
    return cs, mean, std


def _reference(output, target):
    eps = 1e-8
    o = output.astype(jnp.float32)
    t = target.astype(jnp.float32)
    dot = jnp.sum(o * t, axis=1)
    no = jnp.maximum(jnp.sqrt(jnp.sum(o * o, axis=1)), eps)
    nt = jnp.maximum(jnp.sqrt(jnp.sum(t * t, axis=1)), eps)
    cs = dot / (no * nt)
    mean = jnp.mean(cs)
    std = jnp.sqrt(jnp.sum((cs - mean) ** 2) / (cs.shape[0] - 1))
    return cs, mean, std


if __name__ == "__main__":
    key = jax.random.PRNGKey(0)
    k1, k2, k3, k4 = jax.random.split(key, 4)

    # (1) Default path: small problem -> single full block, grid (1, 1).
    N, F = 200, 256
    output = jax.random.normal(k1, (N, F), dtype=jnp.float32)
    target = jax.random.normal(k2, (N, F), dtype=jnp.float32)
    cs_ref, mean_ref, std_ref = _reference(output, target)

    cs, mean_cs, std_cs = cosine_similarity(output, target)
    jax.block_until_ready((cs, mean_cs, std_cs))
    assert cs.shape == (N,)
    assert jnp.allclose(cs, cs_ref, atol=1e-5, rtol=1e-5)
    assert jnp.allclose(mean_cs, mean_ref, atol=1e-5, rtol=1e-5)
    assert jnp.allclose(std_cs, std_ref, atol=1e-5, rtol=1e-5)

    # (2) Forced multi-tile N with a ragged last row tile (pipelined grid).
    cs2, mean2, std2 = cosine_similarity(output, target, tile_n=128)
    jax.block_until_ready((cs2, mean2, std2))
    assert jnp.allclose(cs2, cs_ref, atol=1e-5, rtol=1e-5)
    assert jnp.allclose(mean2, mean_ref, atol=1e-5, rtol=1e-5)
    assert jnp.allclose(std2, std_ref, atol=1e-5, rtol=1e-5)

    # (3) Forced F-reduction grid axis (large-F path): VMEM accumulators + pl.when.
    cs3, mean3, std3 = cosine_similarity(output, target, tile_n=128, tile_f=128)
    jax.block_until_ready((cs3, mean3, std3))
    assert jnp.allclose(cs3, cs_ref, atol=1e-5, rtol=1e-5)
    assert jnp.allclose(mean3, mean_ref, atol=1e-5, rtol=1e-5)
    assert jnp.allclose(std3, std_ref, atol=1e-5, rtol=1e-5)

    # (4) Ragged F tile (F % TILE_F != 0): exercises the column masking.
    Nr, Fr = 200, 200
    o_r = jax.random.normal(k3, (Nr, Fr), dtype=jnp.float32)
    t_r = jax.random.normal(k4, (Nr, Fr), dtype=jnp.float32)
    csr_ref, meanr_ref, stdr_ref = _reference(o_r, t_r)
    cs4, mean4, std4 = cosine_similarity(o_r, t_r, tile_n=128, tile_f=128)
    jax.block_until_ready((cs4, mean4, std4))
    assert jnp.allclose(cs4, csr_ref, atol=1e-5, rtol=1e-5)
    assert jnp.allclose(mean4, meanr_ref, atol=1e-5, rtol=1e-5)
    assert jnp.allclose(std4, stdr_ref, atol=1e-5, rtol=1e-5)

    print("KERNEL_OK")
</pallas_src>

<mosaic_0001>
module attributes {stable_mosaic.version = 11 : i64} {
  func.func @_cosine_kernel(%arg0: i32, %arg1: i32, %arg2: memref<200x256xf32, #tpu.memory_space<vmem>>, %arg3: memref<200x256xf32, #tpu.memory_space<vmem>>, %arg4: memref<1x200xf32, #tpu.memory_space<vmem>>, %arg5: memref<200x1xf32, #tpu.memory_space<vmem>>, %arg6: memref<200x1xf32, #tpu.memory_space<vmem>>, %arg7: memref<200x1xf32, #tpu.memory_space<vmem>>) attributes {dimension_semantics = [#tpu.dimension_semantics<parallel>, #tpu.dimension_semantics<arbitrary>], iteration_bounds = array<i64: 1, 1>, scalar_prefetch = 0 : i64, scratch_operands = 3 : i64, tpu.core_type = #tpu.core_type<tc>, window_params = [{transform_indices = @transform_0, window_bounds = array<i64: 200, 256>}, {transform_indices = @transform_1, window_bounds = array<i64: 200, 256>}, {transform_indices = @transform_2, window_bounds = array<i64: 1, 200>}]} {
    %c0 = arith.constant 0 : index
    %c0_0 = arith.constant 0 : index
    %0 = vector.load %arg2[%c0, %c0_0] : memref<200x256xf32, #tpu.memory_space<vmem>>, vector<200x256xf32>
    %c0_1 = arith.constant 0 : index
    %c0_2 = arith.constant 0 : index
    %1 = vector.load %arg3[%c0_1, %c0_2] : memref<200x256xf32, #tpu.memory_space<vmem>>, vector<200x256xf32>
    %2 = arith.mulf %0, %1 : vector<200x256xf32>
    %cst = arith.constant dense<0.000000e+00> : vector<200xf32>
    %3 = vector.multi_reduction <add>, %2, %cst [1] : vector<200x256xf32> to vector<200xf32>
    %4 = vector.shape_cast %3 : vector<200xf32> to vector<200x1xf32>
    %5 = arith.mulf %0, %0 : vector<200x256xf32>
    %cst_3 = arith.constant dense<0.000000e+00> : vector<200xf32>
    %6 = vector.multi_reduction <add>, %5, %cst_3 [1] : vector<200x256xf32> to vector<200xf32>
    %7 = vector.shape_cast %6 : vector<200xf32> to vector<200x1xf32>
    %8 = arith.mulf %1, %1 : vector<200x256xf32>
    %cst_4 = arith.constant dense<0.000000e+00> : vector<200xf32>
    %9 = vector.multi_reduction <add>, %8, %cst_4 [1] : vector<200x256xf32> to vector<200xf32>
    %10 = vector.shape_cast %9 : vector<200xf32> to vector<200x1xf32>
    %cst_5 = arith.constant 1.000000e-16 : f32
    %11 = vector.broadcast %cst_5 : f32 to vector<200x1xf32>
    %12 = arith.maximumf %7, %11 : vector<200x1xf32>
    %13 = math.rsqrt %12 : vector<200x1xf32>
    %cst_6 = arith.constant 1.000000e-16 : f32
    %14 = vector.broadcast %cst_6 : f32 to vector<200x1xf32>
    %15 = arith.maximumf %10, %14 : vector<200x1xf32>
    %16 = math.rsqrt %15 : vector<200x1xf32>
    %17 = arith.mulf %13, %16 : vector<200x1xf32>
    %18 = arith.mulf %4, %17 : vector<200x1xf32>
    %19 = vector.shape_cast %18 : vector<200x1xf32> to vector<1x200xf32>
    %c0_7 = arith.constant 0 : index
    %c0_8 = arith.constant 0 : index
    %20 = vector.load %arg4[%c0_7, %c0_8] : memref<1x200xf32, #tpu.memory_space<vmem>>, vector<1x200xf32>
    tpu.vector_store %arg4[%c0_7, %c0_8], %19 {strides = array<i32>} : memref<1x200xf32, #tpu.memory_space<vmem>>, vector<1x200xf32>,
    return
  }
  func.func @transform_0(%arg0: i32, %arg1: i32) -> (i32, i32) {
    %c0_i32 = arith.constant 0 : i32
    return %arg0, %arg1 : i32, i32
  }
  func.func @transform_1(%arg0: i32, %arg1: i32) -> (i32, i32) {
    %c0_i32 = arith.constant 0 : i32
    return %arg0, %arg1 : i32, i32
  }
  func.func @transform_2(%arg0: i32, %arg1: i32) -> (i32, i32) {
    %c0_i32 = arith.constant 0 : i32
    %c0_i32_0 = arith.constant 0 : i32
    return %c0_i32, %arg0 : i32, i32
  }
}

</mosaic_0001>

<bundles_post_ra>
// kernel: tpu_custom_call.1
= control target key start
LH: loop header
LB: loop body
LE: loop exit
PB: predicated region body
PF: predicated region fallthrough
CT: control target
= control target key end

     0   :  { %7 = vsyncpa [#allocation6], 0  ;;  %s3494_s0 = inlined_call_operand.hbm [shape: f32[200,256], index: 0, kind: input, shape index: {}]   ;;  %s3495_s1 = inlined_call_operand.hbm [shape: f32[200,256], index: 1, kind: input, shape index: {}]   ;;  %s3496_s2 = inlined_call_operand.hbm [shape: f32[1,200], index: 2, kind: output, shape index: {}]  }
   0x1   :  { %8 = vsyncpa [#allocation9], 0 }
   0x2   :  { %9 = vsyncpa [#allocation7], 0  ;;  %s14_s11 = sshll.u32 %s3494_s0, 4  ;;  %s1945_s12 = smov [#allocation5]   ;;  %s15_s11 = int_to_ptr.hbm [resolvable:$true] %s14_s11 }
   0x3   :  { %s16_s13 = sshll.u32 %s1945_s12, 4  ;;  %s27_s16 = sshll.u32 %s3495_s1, 4  ;;  %s17_s13 = int_to_ptr.vmem [resolvable:$true] %s16_s13  ;;  %s28_s16 = int_to_ptr.hbm [resolvable:$true] %s27_s16 }
   0x4   :  { %s1946_s17 = smov 256   ;;  %s1947_s18 = smov 16  }
   0x5   :  { %22 = dma.hbm_to_vmem [thread:$0]  %s15_s11, 6400, %s17_s13, [#allocation6], %s1946_s17, %s1946_s17, %s1947_s18  }
   0x6   :  { %s1948_s19 = smov [#allocation8]  }
   0x7   :  { %s29_s20 = sshll.u32 %s1948_s19, 4  ;;  %s30_s20 = int_to_ptr.vmem [resolvable:$true] %s29_s20 }
   0x8   :  { %35 = dma.hbm_to_vmem [thread:$0]  %s28_s16, 6400, %s30_s20, [#allocation9], %s1946_s17, %s1946_s17, %s1947_s18  }
   0x9   :  { %1939 = dma.done.wait [#allocation6], 6400  }
   0xa   :  { %1940 = vsyncadd [#allocation6], 4294960896 }
   0xb   :  { %1941 = dma.done.wait [#allocation9], 6400  }
   0xc   :  { %1942 = vsyncadd [#allocation9], 4294960896  ;;  %v1972_v0 = vld [vmem:[#allocation5 + $0x40] sm:$0xff]  ;;  %v1974_v1 = vld [vmem:[#allocation5 + $0x48] sm:$0xff]  ;;  %s1950_s0 = smov [#allocation10]   ;;  %s1747_s23 = sshll.u32 %s3496_s2, 4  ;;  %s1748_s23 = int_to_ptr.hbm [resolvable:$true] %s1747_s23 }
   0xd   :  { %v1976_v2 = vld [vmem:[#allocation8 + $0x40] sm:$0xff]  ;;  %v1978_v3 = vld [vmem:[#allocation8 + $0x48] sm:$0xff]  ;;  %v1982_v5 = vld [vmem:[#allocation5 + $0x20] sm:$0xff]  ;;  %s1745_s1 = sshll.u32 %s1950_s0, 4  ;;  %s1746_s1 = int_to_ptr.vmem [resolvable:$true] %s1745_s1 }
   0xe   :  { %v152_v4 = vmul.f32 %v1976_v2, %v1972_v0  ;;  %v1984_v6 = vld [vmem:[#allocation5 + $0x28] sm:$0xff]  ;;  %v153_v7 = vmul.f32 %v1978_v3, %v1974_v1  ;;  %v1988_v8 = vld [vmem:[#allocation8 + $0x20] sm:$0xff]  ;;  %v1990_v9 = vld [vmem:[#allocation8 + $0x28] sm:$0xff] }
   0xf   :  { %v1992_v10 = vld [vmem:[#allocation5] sm:$0xff]  ;;  %v148_v11 = vmul.f32 %v1988_v8, %v1982_v5  ;;  %v149_v12 = vmul.f32 %v1990_v9, %v1984_v6  ;;  %v1998_v13 = vld [vmem:[#allocation5 + $0x8] sm:$0xff]  ;;  %v2000_v14 = vld [vmem:[#allocation8] sm:$0xff] }
  0x10   :  { %v2002_v15 = vld [vmem:[#allocation8 + $0x8] sm:$0xff]  ;;  %v206_v16 = vadd.f32 %v153_v7, %v152_v4  ;;  %v144_v17 = vmul.f32 %v2000_v14, %v1992_v10  ;;  %v2008_v19 = vld [vmem:[#allocation5 + $0x50] sm:$0xff]  ;;  %v2012_v21 = vld [vmem:[#allocation8 + $0x50] sm:$0xff] }
  0x11   :  { %v145_v18 = vmul.f32 %v2002_v15, %v1998_v13  ;;  %v2010_v20 = vld [vmem:[#allocation5 + $0x58] sm:$0xff]  ;;  %v200_v22 = vadd.f32 %v149_v12, %v148_v11  ;;  %v2014_v23 = vld [vmem:[#allocation8 + $0x58] sm:$0xff]  ;;  %v2016_v24 = vld [vmem:[#allocation5 + $0x30] sm:$0xff]  ;;  %v154_v27 = vmul.f32 %v2012_v21, %v2008_v19 }
  0x12   :  { %v2018_v25 = vld [vmem:[#allocation5 + $0x38] sm:$0xff]  ;;  %207 = vadd.xlane.f32.xlu2 %v206_v16  ;;  %v155_v28 = vmul.f32 %v2014_v23, %v2010_v20  ;;  %v2024_v29 = vld [vmem:[#allocation8 + $0x30] sm:$0xff]  ;;  %v2026_v30 = vld [vmem:[#allocation8 + $0x38] sm:$0xff] }
  0x13   :  { %v194_v26 = vadd.f32 %v145_v18, %v144_v17  ;;  %v2028_v31 = vld [vmem:[#allocation5 + $0x10] sm:$0xff]  ;;  %201 = vadd.xlane.f32.xlu1 %v200_v22  ;;  %v150_v32 = vmul.f32 %v2024_v29, %v2016_v24  ;;  %v151_v33 = vmul.f32 %v2026_v30, %v2018_v25  ;;  %v2034_v34 = vld [vmem:[#allocation5 + $0x18] sm:$0xff]  ;;  %v2036_v35 = vld [vmem:[#allocation8 + $0x10] sm:$0xff] }
  0x14   :  { %v2038_v36 = vld [vmem:[#allocation8 + $0x18] sm:$0xff]  ;;  %v146_v37 = vmul.f32 %v2036_v35, %v2028_v31  ;;  %v209_v39 = vadd.f32 %v155_v28, %v154_v27  ;;  %v2044_v40 = vld [vmem:[#allocation5 + $0x80] sm:$0xff]  ;;  %v2048_v42 = vld [vmem:[#allocation8 + $0x80] sm:$0xff] }
  0x15   :  { %195 = vadd.xlane.f32.xlu0 %v194_v26  ;;  %v147_v38 = vmul.f32 %v2038_v36, %v2034_v34  ;;  %v2046_v41 = vld [vmem:[#allocation5 + $0x88] sm:$0xff]  ;;  %3540 = vst [vmem:[#allocation14_spill] sm:$0xff] %v2048_v42  ;;  %v203_v43 = vadd.f32 %v151_v33, %v150_v32  ;;  %v2050_v44 = vld [vmem:[#allocation8 + $0x88] sm:$0xff]  ;;  %v2052_v45 = vld [vmem:[#allocation5 + $0x70] sm:$0xff]  ;;  %v160_v54 = vmul.f32 %v2048_v42, %v2044_v40 }
  0x16   :  { %3541 = vst [vmem:[#allocation15_spill] sm:$0xff] %v2050_v44  ;;  %v2054_v46 = vld [vmem:[#allocation5 + $0x78] sm:$0xff]  ;;  %v2056_v48 = vld [vmem:[#allocation8 + $0x70] sm:$0xff]  ;;  %v2058_v49 = vld [vmem:[#allocation8 + $0x78] sm:$0xff]  ;;  %v161_v55 = vmul.f32 %v2050_v44, %v2046_v41 }
  0x17   :  { %v197_v47 = vadd.f32 %v147_v38, %v146_v37  ;;  %v2060_v50 = vld [vmem:[#allocation5 + $0x60] sm:$0xff]  ;;  %v2062_v51 = vld [vmem:[#allocation5 + $0x68] sm:$0xff]  ;;  %v2064_v52 = vld [vmem:[#allocation8 + $0x60] sm:$0xff]  ;;  %v158_v56 = vmul.f32 %v2056_v48, %v2052_v45  ;;  %v159_v57 = vmul.f32 %v2058_v49, %v2054_v46 }
  0x18   :  { %v2066_v53 = vld [vmem:[#allocation8 + $0x68] sm:$0xff]  ;;  %v156_v58 = vmul.f32 %v2064_v52, %v2060_v50  ;;  %v218_v60 = vadd.f32 %v161_v55, %v160_v54  ;;  %v2080_v61 = vld [vmem:[#allocation5 + $0xb0] sm:$0xff]  ;;  %v2084_v63 = vld [vmem:[#allocation8 + $0xb0] sm:$0xff] }
  0x19   :  { %v157_v59 = vmul.f32 %v2066_v53, %v2062_v51  ;;  %v2082_v62 = vld [vmem:[#allocation5 + $0xb8] sm:$0xff]  ;;  %3542 = vst [vmem:[#allocation16_spill] sm:$0xff] %v2084_v63  ;;  %v215_v4 = vadd.f32 %v159_v57, %v158_v56  ;;  %v2086_v7 = vld [vmem:[#allocation8 + $0xb8] sm:$0xff]  ;;  %v2088_v11 = vld [vmem:[#allocation5 + $0xa0] sm:$0xff]  ;;  %v166_v32 = vmul.f32 %v2084_v63, %v2080_v61 }
  0x1a   :  { %210 = vadd.xlane.f32.xlu2 %v209_v39  ;;  %3543 = vst [vmem:[#allocation17_spill] sm:$0xff] %v2086_v7  ;;  %v2090_v12 = vld [vmem:[#allocation5 + $0xa8] sm:$0xff]  ;;  %v2092_v17 = vld [vmem:[#allocation8 + $0xa0] sm:$0xff]  ;;  %v2094_v18 = vld [vmem:[#allocation8 + $0xa8] sm:$0xff]  ;;  %v167_v33 = vmul.f32 %v2086_v7, %v2082_v62 }
  0x1b   :  { %204 = vadd.xlane.f32.xlu1 %v203_v43  ;;  %v212_v16 = vadd.f32 %v157_v59, %v156_v58  ;;  %3544 = vst [vmem:[#allocation18_spill] sm:$0xff] %v2092_v17  ;;  %v2096_v22 = vld [vmem:[#allocation5 + $0x90] sm:$0xff]  ;;  %v2098_v26 = vld [vmem:[#allocation5 + $0x98] sm:$0xff]  ;;  %v2100_v27 = vld [vmem:[#allocation8 + $0x90] sm:$0xff]  ;;  %v164_v37 = vmul.f32 %v2092_v17, %v2088_v11  ;;  %v165_v38 = vmul.f32 %v2094_v18, %v2090_v12 }
  0x1c   :  { %3545 = vst [vmem:[#allocation19_spill] sm:$0xff] %v2094_v18  ;;  %v2102_v28 = vld [vmem:[#allocation8 + $0x98] sm:$0xff]  ;;  %v162_v39 = vmul.f32 %v2100_v27, %v2096_v22  ;;  %v2116_v54 = vld [vmem:[#allocation5 + $0xe0] sm:$0xff]  ;;  %v2120_v56 = vld [vmem:[#allocation8 + $0xe0] sm:$0xff] }
  0x1d   :  { %198 = vadd.xlane.f32.xlu0 %v197_v47  ;;  %3546 = vst [vmem:[#allocation20_spill] sm:$0xff] %v2100_v27  ;;  %v163_v43 = vmul.f32 %v2102_v28, %v2098_v26  ;;  %v227_v47 = vadd.f32 %v167_v33, %v166_v32  ;;  %v2118_v55 = vld [vmem:[#allocation5 + $0xe8] sm:$0xff]  ;;  %v224_v57 = vadd.f32 %v165_v38, %v164_v37  ;;  %v2122_v58 = vld [vmem:[#allocation8 + $0xe8] sm:$0xff]  ;;  %v2124_v59 = vld [vmem:[#allocation5 + $0xd0] sm:$0xff] }
  0x1e   :  { %3547 = vst [vmem:[#allocation21_spill] sm:$0xff] %v2102_v28  ;;  %v2130_v18 = vld [vmem:[#allocation8 + $0xd8] sm:$0xff]  ;;  %v2132_v17 = vld [vmem:[#allocation5 + $0xc0] sm:$0xff]  ;;  %v2136_v33 = vld [vmem:[#allocation8 + $0xc0] sm:$0xff]  ;;  %v172_v37 = vmul.f32 %v2120_v56, %v2116_v54  ;;  %v173_v38 = vmul.f32 %v2122_v58, %v2118_v55 }
  0x1f   :  { %3548 = vst [vmem:[#allocation22_spill] sm:$0xff] %v2116_v54  ;;  %v2134_v32 = vld [vmem:[#allocation5 + $0xc8] sm:$0xff]  ;;  %v2138_v7 = vld [vmem:[#allocation8 + $0xc8] sm:$0xff]  ;;  %v168_v63 = vmul.f32 %v2136_v33, %v2132_v17  ;;  %v2152_v27 = vld [vmem:[#allocation5 + $0x110] sm:$0xff] }
  0x20   :  { %3549 = vst [vmem:[#allocation23_spill] sm:$0xff] %v2118_v55  ;;  %v236_v28 = vadd.f32 %v173_v38, %v172_v37  ;;  %v2158_v55 = vld [vmem:[#allocation8 + $0x118] sm:$0xff]  ;;  %v2164_v54 = vld [vmem:[#allocation8 + $0x100] sm:$0xff]  ;;  %v269_v37 = vmul.f32 %v1992_v10, %v1992_v10  ;;  %v2172_v38 = vld [vmem:[#allocation5 + $0xf8] sm:$0xff] }
  0x21   :  { %3550 = vst [vmem:[#allocation24_spill] sm:$0xff] %v2120_v56  ;;  %v2154_v56 = vld [vmem:[#allocation5 + $0x118] sm:$0xff]  ;;  %v2174_v44 = vld [vmem:[#allocation8 + $0xf0] sm:$0xff] }
  0x22   :  { %219 = vadd.xlane.f32.xlu2 %v218_v60  ;;  %3551 = vst [vmem:[#allocation25_spill] sm:$0xff] %v2122_v58  ;;  %v2126_v60 = vld [vmem:[#allocation5 + $0xd8] sm:$0xff]  ;;  %v2156_v58 = vld [vmem:[#allocation8 + $0x110] sm:$0xff] }
  0x23   :  { %216 = vadd.xlane.f32.xlu1 %v215_v4  ;;  %v221_v4 = vadd.f32 %v163_v43, %v162_v39  ;;  %3553 = vst [vmem:[#allocation27_spill] sm:$0xff] %v2130_v18  ;;  %v171_v43 = vmul.f32 %v2130_v18, %v2126_v60  ;;  %v2162_v18 = vld [vmem:[#allocation5 + $0x108] sm:$0xff] }
  0x24   :  { %3554 = vst [vmem:[#allocation28_spill] sm:$0xff] %v2134_v32 }
  0x25   :  { %213 = vadd.xlane.f32.xlu0 %v212_v16  ;;  %v2128_v16 = vld [vmem:[#allocation8 + $0xd0] sm:$0xff]  ;;  %3555 = vst [vmem:[#allocation29_spill] sm:$0xff] %v2136_v33  ;;  %v2166_v33 = vld [vmem:[#allocation8 + $0x108] sm:$0xff] }
  0x26   :  { %3552 = vst [vmem:[#allocation26_spill] sm:$0xff] %v2128_v16  ;;  %v170_v39 = vmul.f32 %v2128_v16, %v2124_v59  ;;  %v2160_v16 = vld [vmem:[#allocation5 + $0x100] sm:$0xff]  ;;  %v177_v42 = vmul.f32 %v2166_v33, %v2162_v18 }
  0x27   :  { %3556 = vst [vmem:[#allocation30_spill] sm:$0xff] %v2138_v7  ;;  %v176_v10 = vmul.f32 %v2164_v54, %v2160_v16 }
  0x28   :  { %3557 = vst [vmem:[#allocation31_spill] sm:$0xff] %v2152_v27 }
  0x29   :  { %3558 = vst [vmem:[#allocation32_spill] sm:$0xff] %v2154_v56 }
  0x2a   :  { %228 = vadd.xlane.f32.xlu2 %v227_v47  ;;  %v169_v47 = vmul.f32 %v2138_v7, %v2134_v32  ;;  %3559 = vst [vmem:[#allocation33_spill] sm:$0xff] %v2156_v58  ;;  %v2168_v7 = vld [vmem:[#allocation5 + $0xf0] sm:$0xff] }
  0x2b   :  { %225 = vadd.xlane.f32.xlu1 %v224_v57  ;;  %v233_v57 = vadd.f32 %v171_v43, %v170_v39  ;;  %3560 = vst [vmem:[#allocation34_spill] sm:$0xff] %v2158_v55  ;;  %v2176_v39 = vld [vmem:[#allocation8 + $0xf8] sm:$0xff]  ;;  %v270_v43 = vmul.f32 %v1998_v13, %v1998_v13  ;;  %v174_v13 = vmul.f32 %v2174_v44, %v2168_v7 }
  0x2c   :  { %3561 = vst [vmem:[#allocation35_spill] sm:$0xff] %v2160_v16  ;;  %v2218_v16 = vld [vmem:[#allocation5 + $0x128] sm:$0xff] }
  0x2d   :  { %222 = vadd.xlane.f32.xlu0 %v221_v4  ;;  %3562 = vst [vmem:[#allocation36_spill] sm:$0xff] %v2162_v18  ;;  %v230_v4 = vadd.f32 %v169_v47, %v168_v63  ;;  %v178_v63 = vmul.f32 %v2156_v58, %v2152_v27  ;;  %v179_v47 = vmul.f32 %v2158_v55, %v2154_v56  ;;  %v2198_v55 = vld [vmem:[#allocation5 + $0x140] sm:$0xff]  ;;  %v2214_v27 = vld [vmem:[#allocation8 + $0x138] sm:$0xff] }
  0x2e   :  { %3563 = vst [vmem:[#allocation37_spill] sm:$0xff] %v2164_v54  ;;  %v2188_v32 = vadd.f32 %v270_v43, %v269_v37  ;;  %v273_v58 = vmul.f32 %v1982_v5, %v1982_v5  ;;  %v2200_v54 = vld [vmem:[#allocation5 + $0x148] sm:$0xff]  ;;  %v2206_v43 = vld [vmem:[#allocation5 + $0x130] sm:$0xff]  ;;  %v242_v56 = vadd.f32 %v177_v42, %v176_v10  ;;  %v2212_v5 = vld [vmem:[#allocation8 + $0x130] sm:$0xff] }
  0x2f   :  { %3564 = vst [vmem:[#allocation38_spill] sm:$0xff] %v2166_v33  ;;  %v2202_v33 = vld [vmem:[#allocation8 + $0x140] sm:$0xff]  ;;  %v245_v37 = vadd.f32 %v179_v47, %v178_v63  ;;  %v2222_v63 = vld [vmem:[#allocation8 + $0x128] sm:$0xff]  ;;  %v271_v47 = vmul.f32 %v2028_v31, %v2028_v31 }
  0x30   :  { %3565 = vst [vmem:[#allocation39_spill] sm:$0xff] %v2172_v38  ;;  %v184_v42 = vmul.f32 %v2202_v33, %v2198_v55 }
  0x31   :  { %3566 = vst [vmem:[#allocation40_spill] sm:$0xff] %v2174_v44  ;;  %v2208_v44 = vld [vmem:[#allocation5 + $0x138] sm:$0xff] }
  0x32   :  { %3567 = vst [vmem:[#allocation41_spill] sm:$0xff] %v2176_v39  ;;  %237 = vadd.xlane.f32.xlu2 %v236_v28  ;;  %v175_v28 = vmul.f32 %v2176_v39, %v2172_v38  ;;  %v2220_v38 = vld [vmem:[#allocation8 + $0x120] sm:$0xff] }
  0x33   :  { %234 = vadd.xlane.f32.xlu1 %v233_v57  ;;  %v274_v57 = vmul.f32 %v1984_v6, %v1984_v6  ;;  %3568 = vst [vmem:[#allocation42_spill] sm:$0xff] %v2198_v55  ;;  %v2216_v6 = vld [vmem:[#allocation5 + $0x120] sm:$0xff] }
  0x34   :  { %3569 = vst [vmem:[#allocation43_spill] sm:$0xff] %v2200_v54  ;;  %v239_v18 = vadd.f32 %v175_v28, %v174_v13  ;;  %v182_v28 = vmul.f32 %v2212_v5, %v2206_v43  ;;  %v180_v31 = vmul.f32 %v2220_v38, %v2216_v6  ;;  %v2268_v55 = vld [vmem:[#allocation8 + $0x150] sm:$0xff] }
  0x35   :  { %231 = vadd.xlane.f32.xlu0 %v230_v4  ;;  %3570 = vst [vmem:[#allocation44_spill] sm:$0xff] %v2202_v33  ;;  %v2204_v4 = vld [vmem:[#allocation8 + $0x148] sm:$0xff]  ;;  %v2210_v39 = vadd.f32 %v274_v57, %v273_v58  ;;  %v272_v58 = vmul.f32 %v2034_v34, %v2034_v34  ;;  %v183_v57 = vmul.f32 %v2214_v27, %v2208_v44  ;;  %v2254_v33 = vld [vmem:[#allocation5 + $0x160] sm:$0xff] }
  0x36   :  { %3571 = vst [vmem:[#allocation45_spill] sm:$0xff] %v2204_v4  ;;  %v185_v10 = vmul.f32 %v2204_v4, %v2200_v54  ;;  %v181_v34 = vmul.f32 %v2222_v63, %v2218_v16  ;;  %v2252_v4 = vld [vmem:[#allocation8 + $0x178] sm:$0xff]  ;;  %v2266_v54 = vld [vmem:[#allocation5 + $0x158] sm:$0xff] }
  0x37   :  { %3572 = vst [vmem:[#allocation46_spill] sm:$0xff] %v2206_v43  ;;  %v2232_v13 = vadd.f32 %v272_v58, %v271_v47  ;;  %v401_v47 = vmul.f32 %v2026_v30, %v2026_v30  ;;  %v2248_v58 = vld [vmem:[#allocation5 + $0x178] sm:$0xff]  ;;  %v2264_v43 = vld [vmem:[#allocation5 + $0x150] sm:$0xff] }
  0x38   :  { %3573 = vst [vmem:[#allocation47_spill] sm:$0xff] %v2208_v44  ;;  %v2260_v44 = vld [vmem:[#allocation8 + $0x160] sm:$0xff]  ;;  %v2262_v30 = vld [vmem:[#allocation8 + $0x168] sm:$0xff] }
  0x39   :  { %3574 = vst [vmem:[#allocation48_spill] sm:$0xff] %v2212_v5  ;;  %v2250_v5 = vld [vmem:[#allocation8 + $0x170] sm:$0xff] }
  0x3a   :  { %3575 = vst [vmem:[#allocation49_spill] sm:$0xff] %v2214_v27  ;;  %246 = vadd.xlane.f32.xlu2 %v245_v37  ;;  %v400_v37 = vmul.f32 %v2024_v29, %v2024_v29  ;;  %v254_v27 = vadd.f32 %v185_v10, %v184_v42  ;;  %v248_v29 = vadd.f32 %v181_v34, %v180_v31  ;;  %v2270_v42 = vld [vmem:[#allocation8 + $0x158] sm:$0xff] }
  0x3b   :  { %3576 = vst [vmem:[#allocation50_spill] sm:$0xff] %v2218_v16  ;;  %243 = vadd.xlane.f32.xlu1 %v242_v56  ;;  %v2246_v56 = vld [vmem:[#allocation5 + $0x170] sm:$0xff]  ;;  %v275_v10 = vmul.f32 %v2016_v24, %v2016_v24  ;;  %v191_v34 = vmul.f32 %v2252_v4, %v2248_v58  ;;  %v188_v24 = vmul.f32 %v2260_v44, %v2254_v33 }
  0x3c   :  { %3577 = vst [vmem:[#allocation51_spill] sm:$0xff] %v2220_v38  ;;  %v2256_v38 = vld [vmem:[#allocation5 + $0x168] sm:$0xff]  ;;  %v190_v31 = vmul.f32 %v2250_v5, %v2246_v56 }
  0x3d   :  { %3578 = vst [vmem:[#allocation52_spill] sm:$0xff] %v2222_v63  ;;  %240 = vadd.xlane.f32.xlu0 %v239_v18  ;;  %v2258_v18 = vadd.f32 %v401_v47, %v400_v37  ;;  %v251_v63 = vadd.f32 %v183_v57, %v182_v28  ;;  %v276_v37 = vmul.f32 %v2018_v25, %v2018_v25 }
  0x3e   :  { %3579 = vst [vmem:[#allocation53_spill] sm:$0xff] %v2250_v5  ;;  %v398_v28 = vmul.f32 %v1988_v8, %v1988_v8  ;;  %v399_v57 = vmul.f32 %v1990_v9, %v1990_v9  ;;  %v189_v25 = vmul.f32 %v2262_v30, %v2256_v38  ;;  %v186_v8 = vmul.f32 %v2268_v55, %v2264_v43  ;;  %v2302_v5 = vld [vmem:[#allocation8 + $0x188] sm:$0xff] }
  0x3f   :  { %3580 = vst [vmem:[#allocation54_spill] sm:$0xff] %v2252_v4  ;;  %v328_v47 = vadd.f32 %v276_v37, %v275_v10  ;;  %v187_v9 = vmul.f32 %v2270_v42, %v2266_v54  ;;  %v403_v10 = vmul.f32 %v1978_v3, %v1978_v3  ;;  %v2296_v37 = vld [vmem:[#allocation5 + $0x180] sm:$0xff]  ;;  %v2300_v4 = vld [vmem:[#allocation8 + $0x180] sm:$0xff]  ;;  %v277_v3 = vmul.f32 %v1972_v0, %v1972_v0 }
  0x40   :  { %3581 = vst [vmem:[#allocation55_spill] sm:$0xff] %v2260_v44  ;;  %v450_v16 = vadd.f32 %v399_v57, %v398_v28  ;;  %v260_v57 = vadd.f32 %v189_v25, %v188_v24  ;;  %v283_v0 = vmul.f32 %v2052_v45, %v2052_v45 }
  0x41   :  { %3582 = vst [vmem:[#allocation56_spill] sm:$0xff] %v2262_v30  ;;  %v257_v44 = vadd.f32 %v187_v9, %v186_v8  ;;  %v2298_v30 = vld [vmem:[#allocation5 + $0x188] sm:$0xff] }
  0x42   :  { %255 = vadd.xlane.f32.xlu2 %v254_v27  ;;  %v402_v27 = vmul.f32 %v1976_v2, %v1976_v2  ;;  %v280_v2 = vmul.f32 %v2010_v20, %v2010_v20  ;;  %v193_v24 = vmul.f32 %v2302_v5, %v2298_v30  ;;  %v395_v20 = vmul.f32 %v2002_v15, %v2002_v15 }
  0x43   :  { %252 = vadd.xlane.f32.xlu1 %v251_v63  ;;  %v263_v63 = vadd.f32 %v191_v34, %v190_v31  ;;  %v278_v31 = vmul.f32 %v1974_v1, %v1974_v1  ;;  %v192_v34 = vmul.f32 %v2300_v4, %v2296_v37  ;;  %v284_v1 = vmul.f32 %v2054_v46, %v2054_v46 }
  0x44   :  { %v456_v28 = vadd.f32 %v403_v10, %v402_v27  ;;  %v282_v15 = vmul.f32 %v2062_v51, %v2062_v51  ;;  %v396_v46 = vmul.f32 %v2036_v35, %v2036_v35 }
  0x45   :  { %249 = vadd.xlane.f32.xlu0 %v248_v29  ;;  %v279_v29 = vmul.f32 %v2008_v19, %v2008_v19  ;;  %v331_v8 = vadd.f32 %v278_v31, %v277_v3  ;;  %v394_v19 = vmul.f32 %v2000_v14, %v2000_v14  ;;  %v266_v9 = vadd.f32 %v193_v24, %v192_v34 }
  0x46   :  { %v340_v27 = vadd.f32 %v284_v1, %v283_v0  ;;  %v281_v14 = vmul.f32 %v2060_v50, %v2060_v50  ;;  %v407_v3 = vmul.f32 %v2066_v53, %v2066_v53  ;;  %v3587_v0 = vld [vmem:[#allocation22_spill] sm:$0xff] }
  0x47   :  { %v334_v25 = vadd.f32 %v280_v2, %v279_v29  ;;  %v444_v10 = vadd.f32 %v395_v20, %v394_v19  ;;  %v397_v29 = vmul.f32 %v2038_v36, %v2038_v36  ;;  %v406_v2 = vmul.f32 %v2064_v52, %v2064_v52  ;;  %v3586_v19 = vld [vmem:[#allocation39_spill] sm:$0xff] }
  0x48   :  { %v337_v45 = vadd.f32 %v282_v15, %v281_v14  ;;  %v285_v36 = vmul.f32 %v2044_v40, %v2044_v40  ;;  %v286_v52 = vmul.f32 %v2046_v41, %v2046_v41  ;;  %v289_v40 = vmul.f32 %v2088_v11, %v2088_v11 }
  0x49   :  { %v447_v51 = vadd.f32 %v397_v29, %v396_v46  ;;  %v462_v35 = vadd.f32 %v407_v3, %v406_v2  ;;  %v290_v41 = vmul.f32 %v2090_v12, %v2090_v12  ;;  %v300_v20 = vmul.f32 %v3586_v19, %v3586_v19  ;;  %v3593_v2 = vld [vmem:[#allocation35_spill] sm:$0xff] }
  0x4a   :  { %264 = vadd.xlane.f32.xlu2 %v263_v63  ;;  %v404_v63 = vmul.f32 %v2012_v21, %v2012_v21  ;;  %v287_v21 = vmul.f32 %v2096_v22, %v2096_v22  ;;  %v343_v53 = vadd.f32 %v286_v52, %v285_v36  ;;  %v291_v22 = vmul.f32 %v2080_v61, %v2080_v61  ;;  %v3595_v52 = vld [vmem:[#allocation18_spill] sm:$0xff] }
  0x4b   :  { %261 = vadd.xlane.f32.xlu1 %v260_v57  ;;  %v405_v57 = vmul.f32 %v2014_v23, %v2014_v23  ;;  %v288_v23 = vmul.f32 %v2098_v26, %v2098_v26  ;;  %v292_v26 = vmul.f32 %v2082_v62, %v2082_v62  ;;  %v349_v61 = vadd.f32 %v290_v41, %v289_v40 }
  0x4c   :  { %v295_v62 = vmul.f32 %v2124_v59, %v2124_v59  ;;  %v297_v1 = vmul.f32 %v3587_v0, %v3587_v0  ;;  %v301_v3 = vmul.f32 %v3593_v2, %v3593_v2 }
  0x4d   :  { %258 = vadd.xlane.f32.xlu0 %v257_v44  ;;  %v459_v44 = vadd.f32 %v405_v57, %v404_v63  ;;  %v346_v50 = vadd.f32 %v288_v23, %v287_v21  ;;  %v3590_v57 = vld [vmem:[#allocation21_spill] sm:$0xff]  ;;  %v3591_v21 = vld [vmem:[#allocation16_spill] sm:$0xff] }
  0x4e   :  { %v413_v14 = vmul.f32 %v3590_v57, %v3590_v57  ;;  %v416_v23 = vmul.f32 %v3591_v21, %v3591_v21  ;;  %v3605_v57 = vld [vmem:[#allocation43_spill] sm:$0xff] }
  0x52   :  { %267 = vadd.xlane.f32.xlu2 %v266_v9  ;;  %v3588_v9 = vld [vmem:[#allocation23_spill] sm:$0xff] }
  0x53   :  { %445 = vadd.xlane.f32.xlu1 %v444_v10  ;;  %v3589_v10 = vld [vmem:[#allocation20_spill] sm:$0xff] }
  0x54   :  { %v412_v63 = vmul.f32 %v3589_v10, %v3589_v10  ;;  %v3604_v10 = vld [vmem:[#allocation42_spill] sm:$0xff] }
  0x55   :  { %320 = vadd.xlane.f32.xlu0 %v2188_v32  ;;  %v409_v32 = vmul.f32 %v2058_v49, %v2058_v49  ;;  %v293_v49 = vmul.f32 %v2132_v17, %v2132_v17  ;;  %v299_v17 = vmul.f32 %v2168_v7, %v2168_v7 }
  0x56   :  { %v471_v29 = vadd.f32 %v413_v14, %v412_v63  ;;  %v309_v63 = vmul.f32 %v3604_v10, %v3604_v10  ;;  %v310_v14 = vmul.f32 %v3605_v57, %v3605_v57  ;;  %v3615_v10 = vld [vmem:[#allocation34_spill] sm:$0xff]  ;;  %v3616_v57 = vld [vmem:[#allocation37_spill] sm:$0xff] }
  0x5a   :  { %326 = vadd.xlane.f32.xlu2 %v2210_v39  ;;  %v352_v39 = vadd.f32 %v292_v26, %v291_v22  ;;  %v3596_v22 = vld [vmem:[#allocation19_spill] sm:$0xff] }
  0x5b   :  { %448 = vadd.xlane.f32.xlu1 %v447_v51  ;;  %v415_v26 = vmul.f32 %v3596_v22, %v3596_v22 }
  0x5d   :  { %323 = vadd.xlane.f32.xlu0 %v2232_v13 }
  0x62   :  { %454 = vadd.xlane.f32.xlu2 %v2258_v18  ;;  %v3583_v18 = vld [vmem:[#allocation28_spill] sm:$0xff] }
  0x63   :  { %329 = vadd.xlane.f32.xlu1 %v328_v47  ;;  %v294_v11 = vmul.f32 %v3583_v18, %v3583_v18  ;;  %v3584_v47 = vld [vmem:[#allocation14_spill] sm:$0xff]  ;;  %v305_v18 = vmul.f32 %v2216_v6, %v2216_v6 }
  0x64   :  { %v410_v12 = vmul.f32 %v3584_v47, %v3584_v47  ;;  %v3602_v6 = vld [vmem:[#allocation26_spill] sm:$0xff] }
  0x65   :  { %451 = vadd.xlane.f32.xlu0 %v450_v16  ;;  %v408_v16 = vmul.f32 %v2056_v48, %v2056_v48  ;;  %v296_v48 = vmul.f32 %v2126_v60, %v2126_v60 }
  0x67   :  { %v465_v13 = vadd.f32 %v409_v32, %v408_v16  ;;  %v358_v24 = vadd.f32 %v296_v48, %v295_v62  ;;  %v3598_v48 = vld [vmem:[#allocation30_spill] sm:$0xff] }
  0x6a   :  { %457 = vadd.xlane.f32.xlu2 %v456_v28  ;;  %v3585_v28 = vld [vmem:[#allocation15_spill] sm:$0xff] }
  0x6b   :  { %335 = vadd.xlane.f32.xlu1 %v334_v25  ;;  %v411_v31 = vmul.f32 %v3585_v28, %v3585_v28  ;;  %v355_v25 = vadd.f32 %v294_v11, %v293_v49  ;;  %v419_v49 = vmul.f32 %v3598_v48, %v3598_v48  ;;  %v3599_v11 = vld [vmem:[#allocation50_spill] sm:$0xff] }
  0x6c   :  { %v306_v47 = vmul.f32 %v3599_v11, %v3599_v11  ;;  %v318_v11 = vmul.f32 %v2298_v30, %v2298_v30 }
  0x6d   :  { %332 = vadd.xlane.f32.xlu0 %v331_v8  ;;  %v468_v8 = vadd.f32 %v411_v31, %v410_v12  ;;  %v3600_v12 = vld [vmem:[#allocation31_spill] sm:$0xff]  ;;  %v3601_v31 = vld [vmem:[#allocation32_spill] sm:$0xff] }
  0x6e   :  { %v303_v28 = vmul.f32 %v3600_v12, %v3600_v12 }
  0x72   :  { %341 = vadd.xlane.f32.xlu2 %v340_v27  ;;  %v298_v27 = vmul.f32 %v3588_v9, %v3588_v9  ;;  %v3603_v9 = vld [vmem:[#allocation27_spill] sm:$0xff] }
  0x73   :  { %460 = vadd.xlane.f32.xlu1 %v459_v44  ;;  %v364_v44 = vadd.f32 %v300_v20, %v299_v17  ;;  %v373_v20 = vadd.f32 %v306_v47, %v305_v18  ;;  %v317_v18 = vmul.f32 %v2296_v37, %v2296_v37  ;;  %v3611_v47 = vld [vmem:[#allocation41_spill] sm:$0xff] }
  0x74   :  { %v361_v46 = vadd.f32 %v298_v27, %v297_v1  ;;  %v420_v1 = vmul.f32 %v3602_v6, %v3602_v6  ;;  %v421_v27 = vmul.f32 %v3603_v9, %v3603_v9  ;;  %v425_v12 = vmul.f32 %v3611_v47, %v3611_v47  ;;  %v3612_v6 = vld [vmem:[#allocation51_spill] sm:$0xff]  ;;  %v3613_v9 = vld [vmem:[#allocation52_spill] sm:$0xff] }
  0x75   :  { %338 = vadd.xlane.f32.xlu0 %v337_v45 }
  0x7a   :  { %347 = vadd.xlane.f32.xlu2 %v346_v50  ;;  %v3592_v50 = vld [vmem:[#allocation17_spill] sm:$0xff] }
  0x7b   :  { %463 = vadd.xlane.f32.xlu1 %v462_v35  ;;  %v417_v51 = vmul.f32 %v3592_v50, %v3592_v50  ;;  %v3594_v35 = vld [vmem:[#allocation36_spill] sm:$0xff] }
  0x7c   :  { %v302_v36 = vmul.f32 %v3594_v35, %v3594_v35 }
  0x7d   :  { %344 = vadd.xlane.f32.xlu0 %v343_v53  ;;  %v414_v53 = vmul.f32 %v3595_v52, %v3595_v52  ;;  %v477_v40 = vadd.f32 %v417_v51, %v416_v23  ;;  %v483_v51 = vadd.f32 %v421_v27, %v420_v1  ;;  %v314_v52 = vmul.f32 %v2256_v38, %v2256_v38 }
  0x7e   :  { %v430_v1 = vmul.f32 %v3612_v6, %v3612_v6  ;;  %v431_v27 = vmul.f32 %v3613_v9, %v3613_v9 }
  0x82   :  { %353 = vadd.xlane.f32.xlu2 %v352_v39  ;;  %v367_v39 = vadd.f32 %v302_v36, %v301_v3  ;;  %v379_v3 = vadd.f32 %v310_v14, %v309_v63  ;;  %v313_v36 = vmul.f32 %v2254_v33, %v2254_v33  ;;  %v429_v63 = vmul.f32 %v3615_v10, %v3615_v10 }
  0x83   :  { %466 = vadd.xlane.f32.xlu1 %v465_v13  ;;  %v474_v13 = vadd.f32 %v415_v26, %v414_v53  ;;  %v3608_v53 = vld [vmem:[#allocation24_spill] sm:$0xff]  ;;  %v3609_v26 = vld [vmem:[#allocation25_spill] sm:$0xff]  ;;  %v426_v14 = vmul.f32 %v3616_v57, %v3616_v57 }
  0x84   :  { %v422_v22 = vmul.f32 %v3608_v53, %v3608_v53  ;;  %v437_v53 = vmul.f32 %v2270_v42, %v2270_v42 }
  0x85   :  { %350 = vadd.xlane.f32.xlu0 %v349_v61  ;;  %v2376_v34 = vpop.xlane.xlu2 %207  ;;  %v3597_v61 = vld [vmem:[#allocation29_spill] sm:$0xff] }
  0x86   :  { %v2378_v59 = vpop.xlane.xlu1 %201  ;;  %v418_v62 = vmul.f32 %v3597_v61, %v3597_v61 }
  0x88   :  { %v2380_v60 = vpop.xlane.xlu0 %195  ;;  %v480_v17 = vadd.f32 %v419_v49, %v418_v62  ;;  %v385_v62 = vadd.f32 %v314_v52, %v313_v36  ;;  %v436_v52 = vmul.f32 %v2268_v55, %v2268_v55 }
  0x8a   :  { %359 = vadd.xlane.f32.xlu2 %v358_v24  ;;  %v304_v24 = vmul.f32 %v3601_v31, %v3601_v31  ;;  %v316_v31 = vmul.f32 %v2248_v58, %v2248_v58 }
  0x8b   :  { %356 = vadd.xlane.f32.xlu1 %v355_v25 }
  0x8c   :  { %v370_v0 = vadd.f32 %v304_v24, %v303_v28  ;;  %v315_v28 = vmul.f32 %v2246_v56, %v2246_v56  ;;  %v3614_v56 = vld [vmem:[#allocation33_spill] sm:$0xff] }
  0x8d   :  { %469 = vadd.xlane.f32.xlu0 %v468_v8  ;;  %v2394_v15 = vpop.xlane.xlu2 %210  ;;  %v428_v58 = vmul.f32 %v3614_v56, %v3614_v56 }
  0x8e   :  { %v2396_v7 = vpop.xlane.xlu1 %204 }
  0x90   :  { %v2398_v45 = vpop.xlane.xlu0 %198 }
  0x92   :  { %365 = vadd.xlane.f32.xlu2 %v364_v44  ;;  %v3606_v44 = vld [vmem:[#allocation46_spill] sm:$0xff] }
  0x93   :  { %362 = vadd.xlane.f32.xlu1 %v361_v46  ;;  %v307_v46 = vmul.f32 %v3606_v44, %v3606_v44  ;;  %v3617_v44 = vld [vmem:[#allocation38_spill] sm:$0xff] }
  0x95   :  { %472 = vadd.xlane.f32.xlu0 %v471_v29  ;;  %v2412_v16 = vpop.xlane.xlu2 %219  ;;  %v3607_v29 = vld [vmem:[#allocation47_spill] sm:$0xff] }
  0x96   :  { %v2414_v32 = vpop.xlane.xlu1 %216  ;;  %v308_v21 = vmul.f32 %v3607_v29, %v3607_v29 }
  0x98   :  { %v2416_v41 = vpop.xlane.xlu0 %213  ;;  %v376_v35 = vadd.f32 %v308_v21, %v307_v46  ;;  %v427_v46 = vmul.f32 %v3617_v44, %v3617_v44 }
  0x9a   :  { %478 = vadd.xlane.f32.xlu2 %v477_v40  ;;  %v423_v40 = vmul.f32 %v3609_v26, %v3609_v26  ;;  %v492_v36 = vadd.f32 %v427_v46, %v426_v14 }
  0x9b   :  { %368 = vadd.xlane.f32.xlu1 %v367_v39  ;;  %v311_v39 = vmul.f32 %v2264_v43, %v2264_v43  ;;  %v3610_v43 = vld [vmem:[#allocation40_spill] sm:$0xff] }
  0x9c   :  { %v486_v48 = vadd.f32 %v423_v40, %v422_v22  ;;  %v3618_v22 = vld [vmem:[#allocation44_spill] sm:$0xff]  ;;  %v3619_v40 = vld [vmem:[#allocation45_spill] sm:$0xff] }
  0x9d   :  { %475 = vadd.xlane.f32.xlu0 %v474_v13  ;;  %v2430_v25 = vpop.xlane.xlu2 %228  ;;  %v312_v13 = vmul.f32 %v2266_v54, %v2266_v54  ;;  %v424_v54 = vmul.f32 %v3610_v43, %v3610_v43  ;;  %v434_v26 = vmul.f32 %v3618_v22, %v3618_v22 }
  0x9e   :  { %v2432_v8 = vpop.xlane.xlu1 %225 }
  0x9f   :  { %v382_v49 = vadd.f32 %v312_v13, %v311_v39  ;;  %v435_v39 = vmul.f32 %v3619_v40, %v3619_v40  ;;  %v3620_v13 = vld [vmem:[#allocation48_spill] sm:$0xff] }
  0xa0   :  { %v2434_v19 = vpop.xlane.xlu0 %222 }
  0xa2   :  { %481 = vadd.xlane.f32.xlu2 %v480_v17  ;;  %v391_v17 = vadd.f32 %v318_v11, %v317_v18  ;;  %v507_v11 = vadd.f32 %v437_v53, %v436_v52 }
  0xa3   :  { %374 = vadd.xlane.f32.xlu1 %v373_v20  ;;  %v489_v20 = vadd.f32 %v425_v12, %v424_v54  ;;  %v504_v54 = vadd.f32 %v435_v39, %v434_v26 }
  0xa5   :  { %371 = vadd.xlane.f32.xlu0 %v370_v0  ;;  %v2448_v23 = vpop.xlane.xlu2 %237  ;;  %v388_v0 = vadd.f32 %v316_v31, %v315_v28  ;;  %v442_v28 = vmul.f32 %v2300_v4, %v2300_v4  ;;  %v443_v31 = vmul.f32 %v2302_v5, %v2302_v5 }
  0xa6   :  { %v2450_v50 = vpop.xlane.xlu1 %234 }
  0xa7   :  { %v516_v10 = vadd.f32 %v443_v31, %v442_v28 }
  0xa8   :  { %v2452_v2 = vpop.xlane.xlu0 %231 }
  0xaa   :  { %484 = vadd.xlane.f32.xlu2 %v483_v51  ;;  %v498_v51 = vadd.f32 %v431_v27, %v430_v1  ;;  %v3624_v1 = vld [vmem:[#allocation55_spill] sm:$0xff]  ;;  %v3625_v27 = vld [vmem:[#allocation56_spill] sm:$0xff] }
  0xab   :  { %380 = vadd.xlane.f32.xlu1 %v379_v3  ;;  %v438_v9 = vmul.f32 %v3624_v1, %v3624_v1  ;;  %v439_v56 = vmul.f32 %v3625_v27, %v3625_v27 }
  0xad   :  { %377 = vadd.xlane.f32.xlu0 %v376_v35  ;;  %v2466_v61 = vpop.xlane.xlu2 %246  ;;  %v495_v35 = vadd.f32 %v429_v63, %v428_v58 }
  0xae   :  { %v2468_v33 = vpop.xlane.xlu1 %243 }
  0xb0   :  { %v2470_v38 = vpop.xlane.xlu0 %240 }
  0xb2   :  { %386 = vadd.xlane.f32.xlu2 %v385_v62  ;;  %v432_v62 = vmul.f32 %v3620_v13, %v3620_v13 }
  0xb3   :  { %487 = vadd.xlane.f32.xlu1 %v486_v48  ;;  %v3621_v48 = vld [vmem:[#allocation49_spill] sm:$0xff] }
  0xb5   :  { %383 = vadd.xlane.f32.xlu0 %v382_v49  ;;  %v2484_v24 = vpop.xlane.xlu2 %255  ;;  %v433_v49 = vmul.f32 %v3621_v48, %v3621_v48 }
  0xb6   :  { %v2486_v37 = vpop.xlane.xlu1 %252 }
  0xb7   :  { %v501_v12 = vadd.f32 %v433_v49, %v432_v62 }
  0xb8   :  { %v2488_v30 = vpop.xlane.xlu0 %249 }
  0xba   :  { %392 = vadd.xlane.f32.xlu2 %v391_v17  ;;  %v3622_v17 = vld [vmem:[#allocation53_spill] sm:$0xff] }
  0xbb   :  { %490 = vadd.xlane.f32.xlu1 %v489_v20  ;;  %v440_v20 = vmul.f32 %v3622_v17, %v3622_v17 }
  0xbd   :  { %389 = vadd.xlane.f32.xlu0 %v388_v0  ;;  %v2502_v29 = vpop.xlane.xlu2 %264  ;;  %v3623_v0 = vld [vmem:[#allocation54_spill] sm:$0xff] }
  0xbe   :  { %v2504_v21 = vpop.xlane.xlu1 %261  ;;  %v441_v6 = vmul.f32 %v3623_v0, %v3623_v0 }
  0xc0   :  { %v2506_v3 = vpop.xlane.xlu0 %258  ;;  %v513_v14 = vadd.f32 %v441_v6, %v440_v20 }
  0xc2   :  { %499 = vadd.xlane.f32.xlu2 %v498_v51  ;;  %v510_v51 = vadd.f32 %v439_v56, %v438_v9 }
  0xc3   :  { %496 = vadd.xlane.f32.xlu1 %v495_v35 }
  0xc5   :  { %493 = vadd.xlane.f32.xlu0 %v492_v36  ;;  %v2520_v18 = vpop.xlane.xlu2 %267 }
  0xc6   :  { %v446_v55 = vpop.xlane.xlu1 %445 }
  0xc7   :  { %v794_v43 = vmax.f32 %v446_v55, 1e-16 }
  0xc8   :  { %v321_v42 = vpop.xlane.xlu0 %320 }
  0xc9   :  { %v519_v47 = vmax.f32 %v321_v42, 1e-16  ;;  %1767 = vrsqrt.f32 %v794_v43  ;;  %vm825_vm2 = vweird.f32 %v794_v43 }
  0xca   :  { %508 = vadd.xlane.f32.xlu2 %v507_v11 }
  0xcb   :  { %1769 = vrsqrt.f32 %v519_v47  ;;  %505 = vadd.xlane.f32.xlu1 %v504_v54  ;;  %vm550_vm4 = vweird.f32 %v519_v47 }
  0xcd   :  { %502 = vadd.xlane.f32.xlu0 %v501_v12  ;;  %v327_v63 = vpop.xlane.xlu2 %326 }
  0xce   :  { %v449_v58 = vpop.xlane.xlu1 %448  ;;  %v2537_v52 = vmax.f32 %v327_v63, 1e-16 }
  0xcf   :  { %v1768_v4 = vpop.eup %1767  ;;  %v2534_v57 = vmax.f32 %v449_v58, 1e-16 }
  0xd0   :  { %v324_v5 = vpop.xlane.xlu0 %323  ;;  %v820_v46 = vmul.f32 %v1768_v4, %v794_v43  ;;  %vm826_vm0 = vweird.f32 %v1768_v4  ;;  %vm570_vm12 = vweird.f32 %v2537_v52 }
  0xd1   :  { %v1770_v44 = vpop.eup %1769  ;;  %1771 = vrsqrt.f32 %v2534_v57  ;;  %v2539_v53 = vmax.f32 %v324_v5, 1e-16  ;;  %vm827_vm3 = vmor %vm825_vm2, %vm826_vm0  ;;  %vm835_vm7 = vweird.f32 %v2534_v57 }
  0xd2   :  { %v545_v35 = vmul.f32 %v1770_v44, %v519_v47  ;;  %v821_v36 = vmul.f32 %v1768_v4, %v820_v46  ;;  %517 = vadd.xlane.f32.xlu2 %v516_v10  ;;  %vm551_vm1 = vweird.f32 %v1770_v44 }
  0xd3   :  { %514 = vadd.xlane.f32.xlu1 %v513_v14  ;;  %1773 = vrsqrt.f32 %v2539_v53  ;;  %vm552_vm5 = vmor %vm550_vm4, %vm551_vm1  ;;  %vm560_vm10 = vweird.f32 %v2539_v53 }
  0xd4   :  { %v546_v22 = vmul.f32 %v1770_v44, %v545_v35  ;;  %v822_v26 = vmul.f32 0.5, %v821_v36  ;;  %1775 = vrsqrt.f32 %v2537_v52 }
  0xd5   :  { %511 = vadd.xlane.f32.xlu0 %v510_v51  ;;  %v455_v6 = vpop.xlane.xlu2 %454 }
  0xd6   :  { %v547_v40 = vmul.f32 0.5, %v546_v22  ;;  %v823_v39 = vsub.f32 1.5, %v822_v26  ;;  %v330_v27 = vpop.xlane.xlu1 %329  ;;  %v2557_v10 = vmax.f32 %v455_v6, 1e-16 }
  0xd7   :  { %v2543_v13 = vpop.eup %1771 }
  0xd8   :  { %v548_v62 = vsub.f32 1.5, %v547_v40  ;;  %v452_v48 = vpop.xlane.xlu0 %451  ;;  %v824_v49 = vmul.f32 %v1768_v4, %v823_v39  ;;  %v830_v55 = vmul.f32 %v2543_v13, %v2534_v57  ;;  %vm836_vm6 = vweird.f32 %v2543_v13 }
  0xd9   :  { %v1774_v42 = vpop.eup %1773  ;;  %v2548_v28 = vmax.f32 %v452_v48, 1e-16  ;;  %vm2567_vm9 = vmor %vm835_vm7, %vm836_vm6  ;;  %vm855_vm2 = vweird.f32 %v2557_v10 }
  0xda   :  { %v549_v11 = vmul.f32 %v1770_v44, %v548_v62  ;;  %v828_v54 = vsel %vm827_vm3, %v1768_v4, %v824_v49  ;;  %v831_v12 = vmul.f32 %v2543_v13, %v830_v55  ;;  %v555_v17 = vmul.f32 %v1774_v42, %v2539_v53  ;;  %v2551_v20 = vpop.eup %1775 }
  0xdb   :  { %1777 = vrsqrt.f32 %v2548_v28  ;;  %v565_v56 = vmul.f32 %v2551_v20, %v2537_v52  ;;  %vm561_vm8 = vweird.f32 %v1774_v42  ;;  %vm571_vm14 = vweird.f32 %v2551_v20 }
  0xdc   :  { %v553_v31 = vsel %vm552_vm5, %v1770_v44, %v549_v11  ;;  %v832_v43 = vmul.f32 0.5, %v831_v12  ;;  %v556_v1 = vmul.f32 %v1774_v42, %v555_v17  ;;  %v2561_v44 = vmax.f32 %v330_v27, 1e-16  ;;  %vm562_vm11 = vmor %vm560_vm10, %vm561_vm8 }
  0xdd   :  { %v1069_v0 = vmul.f32 %v828_v54, %v553_v31  ;;  %v566_v22 = vmul.f32 %v2551_v20, %v565_v56  ;;  %1779 = vrsqrt.f32 %v2557_v10  ;;  %vm845_vm15 = vweird.f32 %v2548_v28  ;;  %vm572_vm1 = vmor %vm570_vm12, %vm571_vm14 }
  0xde   :  { %v833_v9 = vsub.f32 1.5, %v832_v43  ;;  %v557_v58 = vmul.f32 0.5, %v556_v1  ;;  %1781 = vrsqrt.f32 %v2561_v44  ;;  %v458_v43 = vpop.xlane.xlu2 %457  ;;  %vm580_vm3 = vweird.f32 %v2561_v44 }
  0xdf   :  { %v1094_v47 = vmul.f32 %v1069_v0, %v2380_v60  ;;  %v567_v55 = vmul.f32 0.5, %v566_v22  ;;  %v336_v22 = vpop.xlane.xlu1 %335 }
  0xe0   :  { %v834_v51 = vmul.f32 %v2543_v13, %v833_v9  ;;  %v558_v35 = vsub.f32 1.5, %v557_v58  ;;  %v333_v1 = vpop.xlane.xlu0 %332  ;;  %v2595_v58 = vmax.f32 %v458_v43, 1e-16 }
  0xe1   :  { %v1144_v4 = vperm.slane %v1094_v47, 0  ;;  %v1145_v63 = vperm.slane %v1094_v47, 1  ;;  %v1146_v5 = vperm.slane %v1094_v47, 2  ;;  %v1147_v14 = vperm.slane %v1094_v47, 3  ;;  %v2563_v46 = vpop.eup %1777 }
  0xe2   :  { %v1148_v60 = vperm.slane %v1094_v47, 4  ;;  %v1149_v36 = vperm.slane %v1094_v47, 5  ;;  %v840_v57 = vmul.f32 %v2563_v46, %v2548_v28  ;;  %v1150_v40 = vperm.slane %v1094_v47, 6 }
  0xe3   :  { %1344 = vst [vmem:[#allocation1] ss:$9 sm:$0xff] %v1144_v4  ;;  %v838_v39 = vsel %vm2567_vm9, %v2543_v13, %v834_v51  ;;  %v559_v62 = vmul.f32 %v1774_v42, %v558_v35  ;;  %v1151_v48 = vperm.slane %v1094_v47, 7  ;;  %v2581_v31 = vpop.eup %1779  ;;  %v568_v0 = vsub.f32 1.5, %v567_v55 }
  0xe4   :  { %1346 = vst [vmem:[#allocation1 + $0x1] ss:$9 sm:$0xff] %v1145_v63  ;;  %v841_v49 = vmul.f32 %v2563_v46, %v840_v57  ;;  %v2583_v17 = vpop.eup %1781  ;;  %vm846_vm13 = vweird.f32 %v2563_v46  ;;  %1783 = vrsqrt.f32 %v2595_v58  ;;  %vm856_vm4 = vweird.f32 %v2581_v31 }
  0xe5   :  { %1348 = vst [vmem:[#allocation1 + $0x2] ss:$9 sm:$0xff] %v1146_v5  ;;  %v563_v53 = vsel %vm562_vm11, %v1774_v42, %v559_v62  ;;  %v575_v9 = vmul.f32 %v2583_v17, %v2561_v44  ;;  %v569_v27 = vmul.f32 %v2551_v20, %v568_v0  ;;  %vm2597_vm0 = vmor %vm845_vm15, %vm846_vm13  ;;  %vm581_vm5 = vweird.f32 %v2583_v17 }
  0xe6   :  { %1350 = vst [vmem:[#allocation1 + $0x3] ss:$9 sm:$0xff] %v1147_v14  ;;  %v1070_v11 = vmul.f32 %v838_v39, %v563_v53  ;;  %v842_v54 = vmul.f32 0.5, %v841_v49  ;;  %v2601_v14 = vmax.f32 %v333_v1, 1e-16  ;;  %vm2634_vm6 = vmor %vm855_vm2, %vm856_vm4  ;;  %vm865_vm8 = vweird.f32 %v2595_v58 }
  0xe7   :  { %1352 = vst [vmem:[#allocation1 + $0x4] ss:$9 sm:$0xff] %v1148_v60  ;;  %v573_v26 = vsel %vm572_vm1, %v2551_v20, %v569_v27  ;;  %vm582_vm7 = vmor %vm580_vm3, %vm581_vm5 }
  0xe8   :  { %1354 = vst [vmem:[#allocation1 + $0x5] ss:$9 sm:$0xff] %v1149_v36  ;;  %v1095_v13 = vmul.f32 %v1070_v11, %v2398_v45  ;;  %v843_v12 = vsub.f32 1.5, %v842_v54  ;;  %v850_v45 = vmul.f32 %v2581_v31, %v2557_v10  ;;  %v576_v36 = vmul.f32 %v2583_v17, %v575_v9  ;;  %v461_v11 = vpop.xlane.xlu1 %460 }
  0xe9   :  { %1356 = vst [vmem:[#allocation1 + $0x6] ss:$9 sm:$0xff] %v1150_v40  ;;  %1785 = vrsqrt.f32 %v2601_v14  ;;  %v1949_v54 = vmov 0   ;;  %vm590_vm10 = vweird.f32 %v2601_v14 }
  0xea   :  { %1358 = vst [vmem:[#allocation1 + $0x7] ss:$9 sm:$0xff] %v1151_v48  ;;  %v1152_v6 = vperm.slane %v1095_v13, 0  ;;  %v844_v42 = vmul.f32 %v2563_v46, %v843_v12  ;;  %v1153_v47 = vperm.slane %v1095_v13, 1  ;;  %v1154_v56 = vperm.slane %v1095_v13, 2  ;;  %v2616_v48 = vpop.eup %1783  ;;  %1764 = vset.pattern.permute.xlu0 %v1949_v54  ;;  %1765 = vset.pattern.permute.xlu1 %v1949_v54 }
  0xeb   :  { %v1155_v63 = vperm.slane %v1095_v13, 3  ;;  %v1156_v60 = vperm.slane %v1095_v13, 4  ;;  %v1157_v28 = vperm.slane %v1095_v13, 5  ;;  %v851_v35 = vmul.f32 %v2581_v31, %v850_v45  ;;  %1766 = vset.pattern.permute.xlu2 %v1949_v54 }
  0xec   :  { %v848_v51 = vsel %vm2597_vm0, %v2563_v46, %v844_v42  ;;  %v1158_v57 = vperm.slane %v1095_v13, 6  ;;  %v1159_v40 = vperm.slane %v1095_v13, 7  ;;  %v577_v39 = vmul.f32 0.5, %v576_v36 }
  0xed   :  { %v1071_v46 = vmul.f32 %v848_v51, %v573_v26  ;;  %v852_v52 = vmul.f32 0.5, %v851_v35  ;;  %vm866_vm9 = vweird.f32 %v2616_v48 }
  0xee   :  { %v578_v53 = vsub.f32 1.5, %v577_v39  ;;  %vm2667_vm12 = vmor %vm865_vm8, %vm866_vm9 }
  0xef   :  { %v1096_v62 = vmul.f32 %v1071_v46, %v2378_v59  ;;  %v2618_v20 = vpop.eup %1785  ;;  %v853_v49 = vsub.f32 1.5, %v852_v52  ;;  %v860_v59 = vmul.f32 %v2616_v48, %v2595_v58 }
  0xf0   :  { %v585_v12 = vmul.f32 %v2618_v20, %v2601_v14  ;;  %v579_v43 = vmul.f32 %v2583_v17, %v578_v53  ;;  %vm591_vm11 = vweird.f32 %v2618_v20 }
  0xf1   :  { %v1359_v4 = vld [vmem:[#allocation1] sm:$0xff]  ;;  %v1160_v55 = vperm.slane %v1096_v62, 0  ;;  %v1161_v13 = vperm.slane %v1096_v62, 1  ;;  %v854_v0 = vmul.f32 %v2581_v31, %v853_v49  ;;  %v1163_v1 = vperm.slane %v1096_v62, 3  ;;  %vm592_vm13 = vmor %vm590_vm10, %vm591_vm11 }
  0xf2   :  { %1360 = vst [vmem:[#allocation1] ss:$9 sm:$0xff] %v1152_v6  ;;  %1577 = vperm.xlu0 %1764, %v1359_v4   ;;  %v1162_v6 = vperm.slane %v1096_v62, 2  ;;  %v1164_v9 = vperm.slane %v1096_v62, 4  ;;  %v1165_v27 = vperm.slane %v1096_v62, 5  ;;  %v583_v5 = vsel %vm582_vm7, %v2583_v17, %v579_v43 }
  0xf3   :  { %1361 = vst [vmem:[#allocation1 + $0x1] ss:$9 sm:$0xff] %v1153_v47  ;;  %v2630_v47 = vmax.f32 %v461_v11, 1e-16  ;;  %v2641_v4 = vmax.f32 %v336_v22, 1e-16  ;;  %v858_v10 = vsel %vm2634_vm6, %v2581_v31, %v854_v0 }
  0xf4   :  { %1362 = vst [vmem:[#allocation1 + $0x2] ss:$9 sm:$0xff] %v1154_v56  ;;  %v861_v56 = vmul.f32 %v2616_v48, %v860_v59  ;;  %v1167_v51 = vperm.slane %v1096_v62, 7  ;;  %v1072_v44 = vmul.f32 %v858_v10, %v583_v5 }
  0xf5   :  { %1363 = vst [vmem:[#allocation1 + $0x3] ss:$9 sm:$0xff] %v1155_v63  ;;  %v586_v63 = vmul.f32 %v2618_v20, %v585_v12  ;;  %1787 = vrsqrt.f32 %v2630_v47  ;;  %vm875_vm14 = vweird.f32 %v2630_v47  ;;  %vm600_vm0 = vweird.f32 %v2641_v4 }
  0xf6   :  { %1364 = vst [vmem:[#allocation1 + $0x4] ss:$9 sm:$0xff] %v1156_v60  ;;  %v1166_v60 = vperm.slane %v1096_v62, 6  ;;  %1789 = vrsqrt.f32 %v2641_v4  ;;  %v1097_v31 = vmul.f32 %v1072_v44, %v2396_v7 }
  0xf7   :  { %1365 = vst [vmem:[#allocation1 + $0x5] ss:$9 sm:$0xff] %v1157_v28  ;;  %v862_v28 = vmul.f32 0.5, %v861_v56  ;;  %v587_v35 = vmul.f32 0.5, %v586_v63 }
  0xf8   :  { %1366 = vst [vmem:[#allocation1 + $0x6] ss:$9 sm:$0xff] %v1158_v57  ;;  %v339_v57 = vpop.xlane.xlu0 %338  ;;  %v1168_v52 = vperm.slane %v1097_v31, 0  ;;  %v1169_v62 = vperm.slane %v1097_v31, 1  ;;  %v1171_v54 = vperm.slane %v1097_v31, 3  ;;  %v1172_v12 = vperm.slane %v1097_v31, 4 }
  0xf9   :  { %1367 = vst [vmem:[#allocation1 + $0x7] ss:$9 sm:$0xff] %v1159_v40  ;;  %v863_v17 = vsub.f32 1.5, %v862_v28  ;;  %v588_v22 = vsub.f32 1.5, %v587_v35  ;;  %v464_v40 = vpop.xlane.xlu1 %463  ;;  %v2674_v59 = vmax.f32 %v339_v57, 1e-16  ;;  %v342_v28 = vpop.xlane.xlu2 %341 }
  0xfa   :  { %v2665_v58 = vmax.f32 %v464_v40, 1e-16  ;;  %v1174_v14 = vperm.slane %v1097_v31, 6 }
  0xfb   :  { %v2650_v36 = vpop.eup %1787  ;;  %v864_v39 = vmul.f32 %v2616_v48, %v863_v17  ;;  %v589_v7 = vmul.f32 %v2618_v20, %v588_v22  ;;  %vm610_vm6 = vweird.f32 %v2674_v59 }
  0xfc   :  { %v2653_v26 = vpop.eup %1789  ;;  %v870_v46 = vmul.f32 %v2650_v36, %v2630_v47  ;;  %1791 = vrsqrt.f32 %v2665_v58  ;;  %vm876_vm15 = vweird.f32 %v2650_v36  ;;  %vm885_vm4 = vweird.f32 %v2665_v58 }
  0xfd   :  { %v595_v53 = vmul.f32 %v2653_v26, %v2641_v4  ;;  %v868_v0 = vsel %vm2667_vm12, %v2616_v48, %v864_v39  ;;  %v593_v43 = vsel %vm592_vm13, %v2618_v20, %v589_v7  ;;  %1793 = vrsqrt.f32 %v2674_v59  ;;  %vm2706_vm2 = vmor %vm875_vm14, %vm876_vm15 }
  0xfe   :  { %v1073_v45 = vmul.f32 %v868_v0, %v593_v43  ;;  %vm601_vm1 = vweird.f32 %v2653_v26 }
  0xff   :  { %vm602_vm3 = vmor %vm600_vm0, %vm601_vm1 }
 0x100   :  { %v1368_v42 = vld [vmem:[#allocation1] sm:$0xff]  ;;  %v1098_v56 = vmul.f32 %v1073_v45, %v2376_v34 }
 0x101   :  { %1369 = vst [vmem:[#allocation1] ss:$9 sm:$0xff] %v1160_v55  ;;  %1580 = vperm.xlu1 %1765, %v1368_v42   ;;  %v1170_v55 = vperm.slane %v1097_v31, 2  ;;  %v596_v42 = vmul.f32 %v2653_v26, %v595_v53 }
 0x102   :  { %1370 = vst [vmem:[#allocation1 + $0x1] ss:$9 sm:$0xff] %v1161_v13  ;;  %v871_v13 = vmul.f32 %v2650_v36, %v870_v46  ;;  %v2685_v20 = vpop.eup %1791  ;;  %v1176_v44 = vperm.slane %v1098_v56, 0  ;;  %v1177_v17 = vperm.slane %v1098_v56, 1  ;;  %v1178_v40 = vperm.slane %v1098_v56, 2 }
 0x103   :  { %1371 = vst [vmem:[#allocation1 + $0x2] ss:$9 sm:$0xff] %v1162_v6  ;;  %v1173_v6 = vperm.slane %v1097_v31, 5  ;;  %v597_v48 = vmul.f32 0.5, %v596_v42  ;;  %v2688_v10 = vpop.eup %1793  ;;  %v1179_v46 = vperm.slane %v1098_v56, 3  ;;  %v1180_v4 = vperm.slane %v1098_v56, 4 }
 0x104   :  { %1372 = vst [vmem:[#allocation1 + $0x3] ss:$9 sm:$0xff] %v1163_v1  ;;  %v1175_v1 = vperm.slane %v1097_v31, 7  ;;  %v605_v34 = vmul.f32 %v2688_v10, %v2674_v59  ;;  %v1181_v53 = vperm.slane %v1098_v56, 5  ;;  %v1182_v11 = vperm.slane %v1098_v56, 6 }
 0x105   :  { %1373 = vst [vmem:[#allocation1 + $0x4] ss:$9 sm:$0xff] %v1164_v9  ;;  %v872_v9 = vmul.f32 0.5, %v871_v13  ;;  %v598_v5 = vsub.f32 1.5, %v597_v48  ;;  %vm886_vm5 = vweird.f32 %v2685_v20  ;;  %vm611_vm7 = vweird.f32 %v2688_v10 }
 0x106   :  { %1374 = vst [vmem:[#allocation1 + $0x5] ss:$9 sm:$0xff] %v1165_v27  ;;  %v2683_v27 = vpop.xlane.xlu0 %344  ;;  %vm2739_vm8 = vmor %vm885_vm4, %vm886_vm5 }
 0x107   :  { %1375 = vst [vmem:[#allocation1 + $0x6] ss:$9 sm:$0xff] %v1166_v60  ;;  %v873_v63 = vsub.f32 1.5, %v872_v9  ;;  %v467_v60 = vpop.xlane.xlu1 %466  ;;  %v599_v57 = vmul.f32 %v2653_v26, %v598_v5  ;;  %vm612_vm9 = vmor %vm610_vm6, %vm611_vm7 }
 0x108   :  { %1376 = vst [vmem:[#allocation1 + $0x7] ss:$9 sm:$0xff] %v1167_v51  ;;  %v880_v51 = vmul.f32 %v2685_v20, %v2665_v58  ;;  %v2697_v22 = vmax.f32 %v467_v60, 1e-16 }
 0x109   :  { %v874_v35 = vmul.f32 %v2650_v36, %v873_v63  ;;  %v603_v47 = vsel %vm602_vm3, %v2653_v26, %v599_v57 }
 0x10a   :  { %v881_v7 = vmul.f32 %v2685_v20, %v880_v51  ;;  %1795 = vrsqrt.f32 %v2697_v22  ;;  %vm895_vm12 = vweird.f32 %v2697_v22 }
 0x10f   :  { %v1377_v49 = vld [vmem:[#allocation1] sm:$0xff] }
 0x110   :  { %1378 = vst [vmem:[#allocation1] ss:$9 sm:$0xff] %v1168_v52  ;;  %1583 = vperm.xlu2 %1766, %v1377_v49   ;;  %v2702_v52 = vmax.f32 %v342_v28, 1e-16  ;;  %v878_v49 = vsel %vm2706_vm2, %v2650_v36, %v874_v35  ;;  %v2720_v0 = vpop.eup %1795  ;;  %v2744_v35 = vmax.f32 %v2683_v27, 1e-16 }
 0x111   :  { %1379 = vst [vmem:[#allocation1 + $0x1] ss:$9 sm:$0xff] %v1169_v62  ;;  %v2711_v62 = vpop.xlane.xlu0 %350  ;;  %v1074_v13 = vmul.f32 %v878_v49, %v603_v47  ;;  %vm896_vm13 = vweird.f32 %v2720_v0 }
 0x112   :  { %1380 = vst [vmem:[#allocation1 + $0x2] ss:$9 sm:$0xff] %v1170_v55  ;;  %v606_v55 = vmul.f32 %v2688_v10, %v605_v34  ;;  %1797 = vrsqrt.f32 %v2702_v52  ;;  %vm620_vm10 = vweird.f32 %v2702_v52  ;;  %vm897_vm15 = vmor %vm895_vm12, %vm896_vm13  ;;  %vm630_vm2 = vweird.f32 %v2744_v35 }
 0x113   :  { %1381 = vst [vmem:[#allocation1 + $0x3] ss:$9 sm:$0xff] %v1171_v54  ;;  %v1183_v54 = vperm.slane %v1098_v56, 7  ;;  %v1099_v43 = vmul.f32 %v1074_v13, %v2394_v15 }
 0x114   :  { %1382 = vst [vmem:[#allocation1 + $0x4] ss:$9 sm:$0xff] %v1172_v12  ;;  %v882_v12 = vmul.f32 0.5, %v881_v7  ;;  %v607_v36 = vmul.f32 0.5, %v606_v55 }
 0x115   :  { %1383 = vst [vmem:[#allocation1 + $0x5] ss:$9 sm:$0xff] %v1173_v6  ;;  %v1184_v45 = vperm.slane %v1099_v43, 0  ;;  %v1185_v15 = vperm.slane %v1099_v43, 1  ;;  %v1186_v5 = vperm.slane %v1099_v43, 2  ;;  %v1187_v51 = vperm.slane %v1099_v43, 3 }
 0x116   :  { %1384 = vst [vmem:[#allocation1 + $0x6] ss:$9 sm:$0xff] %v1174_v14  ;;  %v883_v6 = vsub.f32 1.5, %v882_v12  ;;  %v608_v14 = vsub.f32 1.5, %v607_v36  ;;  %v1190_v58 = vperm.slane %v1099_v43, 6 }
 0x117   :  { %1385 = vst [vmem:[#allocation1 + $0x7] ss:$9 sm:$0xff] %v1175_v1  ;;  %v890_v1 = vmul.f32 %v2720_v0, %v2697_v22 }
 0x118   :  { %v2723_v42 = vpop.eup %1797  ;;  %v884_v9 = vmul.f32 %v2685_v20, %v883_v6  ;;  %v609_v60 = vmul.f32 %v2688_v10, %v608_v14 }
 0x119   :  { %v470_v26 = vpop.xlane.xlu0 %469  ;;  %v615_v56 = vmul.f32 %v2723_v42, %v2702_v52  ;;  %vm621_vm11 = vweird.f32 %v2723_v42 }
 0x11a   :  { %v2732_v63 = vmax.f32 %v470_v26, 1e-16  ;;  %v888_v34 = vsel %vm2739_vm8, %v2685_v20, %v884_v9  ;;  %v613_v27 = vsel %vm612_vm9, %v2688_v10, %v609_v60  ;;  %vm2775_vm14 = vmor %vm620_vm10, %vm621_vm11 }
 0x11b   :  { %v616_v57 = vmul.f32 %v2723_v42, %v615_v56  ;;  %v1075_v39 = vmul.f32 %v888_v34, %v613_v27 }
 0x11c   :  { %1799 = vrsqrt.f32 %v2732_v63  ;;  %vm905_vm0 = vweird.f32 %v2732_v63 }
 0x11d   :  { %1801 = vrsqrt.f32 %v2744_v35  ;;  %v617_v20 = vmul.f32 0.5, %v616_v57  ;;  %v1100_v59 = vmul.f32 %v1075_v39, %v2416_v41 }
 0x11e   :  { %v1386_v31 = vld [vmem:[#allocation1] sm:$0xff] }
 0x11f   :  { %1387 = vst [vmem:[#allocation1] ss:$9 sm:$0xff] %v1176_v44  ;;  %1586 = vperm.xlu2 %1766, %v1386_v31   ;;  %v348_v44 = vpop.xlane.xlu2 %347  ;;  %v891_v31 = vmul.f32 %v2720_v0, %v890_v1  ;;  %v618_v55 = vsub.f32 1.5, %v617_v20  ;;  %v1193_v12 = vperm.slane %v1100_v59, 1  ;;  %v1194_v14 = vperm.slane %v1100_v59, 2 }
 0x120   :  { %1388 = vst [vmem:[#allocation1 + $0x1] ss:$9 sm:$0xff] %v1177_v17  ;;  %v1188_v17 = vperm.slane %v1099_v43, 4  ;;  %v2779_v26 = vmax.f32 %v348_v44, 1e-16  ;;  %v1195_v22 = vperm.slane %v1100_v59, 3 }
 0x121   :  { %1389 = vst [vmem:[#allocation1 + $0x2] ss:$9 sm:$0xff] %v1178_v40  ;;  %v1189_v40 = vperm.slane %v1099_v43, 5  ;;  %v892_v7 = vmul.f32 0.5, %v891_v31  ;;  %v473_v10 = vpop.xlane.xlu0 %472  ;;  %v619_v52 = vmul.f32 %v2723_v42, %v618_v55  ;;  %v1199_v60 = vperm.slane %v1100_v59, 7 }
 0x122   :  { %1390 = vst [vmem:[#allocation1 + $0x3] ss:$9 sm:$0xff] %v1179_v46  ;;  %v1191_v46 = vperm.slane %v1099_v43, 7  ;;  %v2772_v43 = vmax.f32 %v473_v10, 1e-16  ;;  %vm640_vm6 = vweird.f32 %v2779_v26 }
 0x123   :  { %1391 = vst [vmem:[#allocation1 + $0x4] ss:$9 sm:$0xff] %v1180_v4  ;;  %v2756_v4 = vpop.eup %1799  ;;  %v893_v49 = vsub.f32 1.5, %v892_v7  ;;  %v2809_v10 = vmax.f32 %v2711_v62, 1e-16 }
 0x124   :  { %1392 = vst [vmem:[#allocation1 + $0x5] ss:$9 sm:$0xff] %v1181_v53  ;;  %v2759_v53 = vpop.eup %1801  ;;  %1803 = vrsqrt.f32 %v2772_v43  ;;  %vm906_vm1 = vweird.f32 %v2756_v4  ;;  %vm915_vm8 = vweird.f32 %v2772_v43 }
 0x125   :  { %1393 = vst [vmem:[#allocation1 + $0x6] ss:$9 sm:$0xff] %v1182_v11  ;;  %v900_v11 = vmul.f32 %v2756_v4, %v2732_v63  ;;  %v894_v13 = vmul.f32 %v2720_v0, %v893_v49  ;;  %v625_v36 = vmul.f32 %v2759_v53, %v2744_v35  ;;  %1805 = vrsqrt.f32 %v2779_v26  ;;  %vm2813_vm4 = vmor %vm905_vm0, %vm906_vm1 }
 0x126   :  { %1394 = vst [vmem:[#allocation1 + $0x7] ss:$9 sm:$0xff] %v1183_v54  ;;  %v1192_v54 = vperm.slane %v1100_v59, 0  ;;  %vm631_vm3 = vweird.f32 %v2759_v53 }
 0x127   :  { %v2761_v47 = vpop.xlane.xlu2 %353  ;;  %v901_v1 = vmul.f32 %v2756_v4, %v900_v11  ;;  %v898_v9 = vsel %vm897_vm15, %v2720_v0, %v894_v13  ;;  %v626_v56 = vmul.f32 %v2759_v53, %v625_v36  ;;  %vm632_vm5 = vmor %vm630_vm2, %vm631_vm3 }
 0x129   :  { %v902_v44 = vmul.f32 0.5, %v901_v1  ;;  %v627_v28 = vmul.f32 0.5, %v626_v56 }
 0x12a   :  { %v2791_v31 = vpop.eup %1803 }
 0x12b   :  { %v903_v34 = vsub.f32 1.5, %v902_v44  ;;  %v2794_v57 = vpop.eup %1805  ;;  %vm916_vm9 = vweird.f32 %v2791_v31 }
 0x12c   :  { %v635_v39 = vmul.f32 %v2794_v57, %v2779_v26  ;;  %vm641_vm7 = vweird.f32 %v2794_v57  ;;  %vm917_vm11 = vmor %vm915_vm8, %vm916_vm9 }
 0x12d   :  { %v1395_v48 = vld [vmem:[#allocation1] sm:$0xff]  ;;  %vm2848_vm10 = vmor %vm640_vm6, %vm641_vm7 }
 0x12e   :  { %1396 = vst [vmem:[#allocation1] ss:$9 sm:$0xff] %v1184_v45  ;;  %1589 = vperm.xlu1 %1765, %v1395_v48   ;;  %v1196_v45 = vperm.slane %v1100_v59, 4  ;;  %v1197_v48 = vperm.slane %v1100_v59, 5  ;;  %v636_v36 = vmul.f32 %v2794_v57, %v635_v39 }
 0x12f   :  { %1397 = vst [vmem:[#allocation1 + $0x1] ss:$9 sm:$0xff] %v1185_v15  ;;  %v623_v15 = vsel %vm2775_vm14, %v2723_v42, %v619_v52  ;;  %v2789_v0 = vpop.xlane.xlu2 %359  ;;  %v628_v42 = vsub.f32 1.5, %v627_v28  ;;  %vm650_vm14 = vweird.f32 %v2809_v10 }
 0x130   :  { %1398 = vst [vmem:[#allocation1 + $0x2] ss:$9 sm:$0xff] %v1186_v5  ;;  %v1198_v5 = vperm.slane %v1100_v59, 6  ;;  %v637_v1 = vmul.f32 0.5, %v636_v36 }
 0x131   :  { %1399 = vst [vmem:[#allocation1 + $0x3] ss:$9 sm:$0xff] %v1187_v51  ;;  %v1076_v51 = vmul.f32 %v898_v9, %v623_v15  ;;  %v629_v59 = vmul.f32 %v2759_v53, %v628_v42  ;;  %v2853_v42 = vmax.f32 %v2761_v47, 1e-16 }
 0x132   :  { %1400 = vst [vmem:[#allocation1 + $0x4] ss:$9 sm:$0xff] %v1188_v17 }
 0x133   :  { %1401 = vst [vmem:[#allocation1 + $0x5] ss:$9 sm:$0xff] %v1189_v40  ;;  %v1101_v17 = vmul.f32 %v1076_v51, %v2414_v32  ;;  %v476_v40 = vpop.xlane.xlu0 %475  ;;  %v633_v63 = vsel %vm632_vm5, %v2759_v53, %v629_v59  ;;  %v638_v53 = vsub.f32 1.5, %v637_v1 }
 0x134   :  { %1402 = vst [vmem:[#allocation1 + $0x6] ss:$9 sm:$0xff] %v1190_v58  ;;  %v910_v58 = vmul.f32 %v2791_v31, %v2772_v43  ;;  %v2803_v20 = vmax.f32 %v476_v40, 1e-16 }
 0x135   :  { %1403 = vst [vmem:[#allocation1 + $0x7] ss:$9 sm:$0xff] %v1191_v46  ;;  %v1200_v27 = vperm.slane %v1101_v17, 0  ;;  %v904_v46 = vmul.f32 %v2756_v4, %v903_v34  ;;  %v1201_v32 = vperm.slane %v1101_v17, 1  ;;  %v1202_v49 = vperm.slane %v1101_v17, 2 }
 0x136   :  { %v1203_v55 = vperm.slane %v1101_v17, 3  ;;  %v911_v13 = vmul.f32 %v2791_v31, %v910_v58  ;;  %v1205_v62 = vperm.slane %v1101_v17, 5  ;;  %1807 = vrsqrt.f32 %v2803_v20 }
 0x137   :  { %v1206_v52 = vperm.slane %v1101_v17, 6  ;;  %v1207_v6 = vperm.slane %v1101_v17, 7  ;;  %1809 = vrsqrt.f32 %v2809_v10  ;;  %v639_v26 = vmul.f32 %v2794_v57, %v638_v53 }
 0x138   :  { %vm925_vm12 = vweird.f32 %v2803_v20 }
 0x139   :  { %v643_v47 = vsel %vm2848_vm10, %v2794_v57, %v639_v26 }
 0x13c   :  { %v1404_v41 = vld [vmem:[#allocation1] sm:$0xff]  ;;  %v2831_v35 = vpop.eup %1807 }
 0x13d   :  { %1405 = vst [vmem:[#allocation1] ss:$9 sm:$0xff] %v1192_v54  ;;  %1592 = vperm.xlu2 %1766, %v1404_v41   ;;  %v2817_v54 = vpop.xlane.xlu2 %365  ;;  %v1204_v41 = vperm.slane %v1101_v17, 4  ;;  %v920_v15 = vmul.f32 %v2831_v35, %v2803_v20  ;;  %vm926_vm13 = vweird.f32 %v2831_v35 }
 0x13e   :  { %1406 = vst [vmem:[#allocation1 + $0x1] ss:$9 sm:$0xff] %v1193_v12  ;;  %v908_v12 = vsel %vm2813_vm4, %v2756_v4, %v904_v46  ;;  %v2829_v4 = vpop.xlane.xlu1 %356  ;;  %vm2894_vm0 = vmor %vm925_vm12, %vm926_vm13  ;;  %vm660_vm4 = vweird.f32 %v2853_v42 }
 0x13f   :  { %1407 = vst [vmem:[#allocation1 + $0x2] ss:$9 sm:$0xff] %v1194_v14  ;;  %v1077_v14 = vmul.f32 %v908_v12, %v633_v63  ;;  %v2887_v53 = vmax.f32 %v2829_v4, 1e-16 }
 0x140   :  { %1408 = vst [vmem:[#allocation1 + $0x3] ss:$9 sm:$0xff] %v1195_v22  ;;  %v912_v22 = vmul.f32 0.5, %v911_v13 }
 0x141   :  { %1409 = vst [vmem:[#allocation1 + $0x4] ss:$9 sm:$0xff] %v1196_v45  ;;  %v1102_v45 = vmul.f32 %v1077_v14, %v2412_v16  ;;  %vm670_vm10 = vweird.f32 %v2887_v53 }
 0x142   :  { %1410 = vst [vmem:[#allocation1 + $0x5] ss:$9 sm:$0xff] %v1197_v48  ;;  %v913_v9 = vsub.f32 1.5, %v912_v22  ;;  %v2834_v48 = vpop.eup %1809 }
 0x143   :  { %1411 = vst [vmem:[#allocation1 + $0x6] ss:$9 sm:$0xff] %v1198_v5  ;;  %v1208_v5 = vperm.slane %v1102_v45, 0  ;;  %v645_v51 = vmul.f32 %v2834_v48, %v2809_v10  ;;  %v1209_v44 = vperm.slane %v1102_v45, 1  ;;  %v1210_v34 = vperm.slane %v1102_v45, 2 }
 0x144   :  { %1412 = vst [vmem:[#allocation1 + $0x7] ss:$9 sm:$0xff] %v1199_v60  ;;  %v914_v60 = vmul.f32 %v2791_v31, %v913_v9  ;;  %v1211_v40 = vperm.slane %v1102_v45, 3  ;;  %v1212_v46 = vperm.slane %v1102_v45, 4  ;;  %v1214_v59 = vperm.slane %v1102_v45, 6 }
 0x145   :  { %v479_v56 = vpop.xlane.xlu2 %478  ;;  %v1215_v43 = vperm.slane %v1102_v45, 7  ;;  %vm651_vm15 = vweird.f32 %v2834_v48 }
 0x146   :  { %v2845_v28 = vmax.f32 %v479_v56, 1e-16  ;;  %v2855_v58 = vpop.xlane.xlu1 %362  ;;  %v918_v39 = vsel %vm917_vm11, %v2791_v31, %v914_v60  ;;  %vm652_vm1 = vmor %vm650_vm14, %vm651_vm15 }
 0x148   :  { %1811 = vrsqrt.f32 %v2845_v28  ;;  %vm935_vm2 = vweird.f32 %v2845_v28 }
 0x149   :  { %1813 = vrsqrt.f32 %v2853_v42 }
 0x14b   :  { %v1413_v7 = vld [vmem:[#allocation1] sm:$0xff] }
 0x14c   :  { %1414 = vst [vmem:[#allocation1] ss:$9 sm:$0xff] %v1200_v27  ;;  %1595 = vperm.xlu1 %1765, %v1413_v7   ;;  %v921_v27 = vmul.f32 %v2831_v35, %v920_v15  ;;  %v646_v7 = vmul.f32 %v2834_v48, %v645_v51 }
 0x14d   :  { %1415 = vst [vmem:[#allocation1 + $0x1] ss:$9 sm:$0xff] %v1201_v32  ;;  %v1213_v32 = vperm.slane %v1102_v45, 5 }
 0x14e   :  { %1416 = vst [vmem:[#allocation1 + $0x2] ss:$9 sm:$0xff] %v1202_v49  ;;  %v1078_v49 = vmul.f32 %v918_v39, %v643_v47  ;;  %v647_v31 = vmul.f32 0.5, %v646_v7  ;;  %v2867_v11 = vpop.eup %1811  ;;  %v2872_v57 = vpop.xlane.xlu1 %368 }
 0x14f   :  { %1417 = vst [vmem:[#allocation1 + $0x3] ss:$9 sm:$0xff] %v1203_v55  ;;  %v922_v55 = vmul.f32 0.5, %v921_v27  ;;  %v2870_v12 = vpop.eup %1813  ;;  %v930_v63 = vmul.f32 %v2867_v11, %v2845_v28  ;;  %vm936_vm3 = vweird.f32 %v2867_v11 }
 0x150   :  { %1418 = vst [vmem:[#allocation1 + $0x4] ss:$9 sm:$0xff] %v1204_v41  ;;  %v1103_v13 = vmul.f32 %v1078_v49, %v2434_v19  ;;  %v648_v36 = vsub.f32 1.5, %v647_v31  ;;  %v655_v19 = vmul.f32 %v2870_v12, %v2853_v42  ;;  %vm661_vm5 = vweird.f32 %v2870_v12  ;;  %vm2921_vm6 = vmor %vm935_vm2, %vm936_vm3 }
 0x151   :  { %1419 = vst [vmem:[#allocation1 + $0x5] ss:$9 sm:$0xff] %v1205_v62  ;;  %v923_v41 = vsub.f32 1.5, %v922_v55  ;;  %v482_v62 = vpop.xlane.xlu2 %481  ;;  %v931_v15 = vmul.f32 %v2867_v11, %v930_v63  ;;  %vm2928_vm7 = vmor %vm660_vm4, %vm661_vm5  ;;  %v2936_v63 = vpop.xlane.xlu0 %371 }
 0x152   :  { %1420 = vst [vmem:[#allocation1 + $0x6] ss:$9 sm:$0xff] %v1206_v52  ;;  %v1216_v52 = vperm.slane %v1103_v13, 0  ;;  %v1217_v22 = vperm.slane %v1103_v13, 1  ;;  %v2881_v1 = vmax.f32 %v482_v62, 1e-16  ;;  %v649_v45 = vmul.f32 %v2834_v48, %v648_v36 }
 0x153   :  { %1421 = vst [vmem:[#allocation1 + $0x7] ss:$9 sm:$0xff] %v1207_v6  ;;  %v924_v6 = vmul.f32 %v2831_v35, %v923_v41  ;;  %v1218_v9 = vperm.slane %v1103_v13, 2  ;;  %v1219_v56 = vperm.slane %v1103_v13, 3  ;;  %v1220_v10 = vperm.slane %v1103_v13, 4 }
 0x154   :  { %v656_v4 = vmul.f32 %v2870_v12, %v655_v19  ;;  %1815 = vrsqrt.f32 %v2881_v1  ;;  %v653_v51 = vsel %vm652_vm1, %v2834_v48, %v649_v45  ;;  %v1222_v20 = vperm.slane %v1103_v13, 6 }
 0x155   :  { %v928_v60 = vsel %vm2894_vm0, %v2831_v35, %v924_v6  ;;  %1817 = vrsqrt.f32 %v2887_v53  ;;  %v932_v26 = vmul.f32 0.5, %v931_v15  ;;  %v2933_v41 = vmax.f32 %v2789_v0, 1e-16 }
 0x156   :  { %v1079_v17 = vmul.f32 %v928_v60, %v653_v51  ;;  %v657_v35 = vmul.f32 0.5, %v656_v4  ;;  %vm945_vm8 = vweird.f32 %v2881_v1 }
 0x157   :  { %v933_v27 = vsub.f32 1.5, %v932_v26  ;;  %vm680_vm0 = vweird.f32 %v2933_v41 }
 0x158   :  { %v658_v48 = vsub.f32 1.5, %v657_v35 }
 0x159   :  { %v485_v7 = vpop.xlane.xlu2 %484  ;;  %v934_v47 = vmul.f32 %v2867_v11, %v933_v27 }
 0x15a   :  { %v1422_v16 = vld [vmem:[#allocation1] sm:$0xff]  ;;  %v2925_v55 = vmax.f32 %v485_v7, 1e-16  ;;  %v659_v31 = vmul.f32 %v2870_v12, %v658_v48  ;;  %v2977_v7 = vmax.f32 %v2855_v58, 1e-16 }
 0x15b   :  { %1423 = vst [vmem:[#allocation1] ss:$9 sm:$0xff] %v1208_v5  ;;  %1598 = vperm.xlu0 %1764, %v1422_v16   ;;  %v1221_v16 = vperm.slane %v1103_v13, 5  ;;  %v938_v6 = vsel %vm2921_vm6, %v2867_v11, %v934_v47 }
 0x15c   :  { %1424 = vst [vmem:[#allocation1 + $0x1] ss:$9 sm:$0xff] %v1209_v44  ;;  %v1223_v44 = vperm.slane %v1103_v13, 7  ;;  %1819 = vrsqrt.f32 %v2925_v55  ;;  %v663_v0 = vsel %vm2928_vm7, %v2870_v12, %v659_v31  ;;  %v2956_v12 = vpop.xlane.xlu0 %377  ;;  %vm955_vm14 = vweird.f32 %v2925_v55 }
 0x15d   :  { %1425 = vst [vmem:[#allocation1 + $0x2] ss:$9 sm:$0xff] %v1210_v34  ;;  %v2905_v34 = vpop.xlane.xlu1 %374  ;;  %1821 = vrsqrt.f32 %v2933_v41  ;;  %vm690_vm6 = vweird.f32 %v2977_v7 }
 0x15e   :  { %1426 = vst [vmem:[#allocation1 + $0x3] ss:$9 sm:$0xff] %v1211_v40  ;;  %v2907_v40 = vpop.eup %1815 }
 0x15f   :  { %1427 = vst [vmem:[#allocation1 + $0x4] ss:$9 sm:$0xff] %v1212_v46  ;;  %v1104_v46 = vmul.f32 %v1079_v17, %v2432_v8  ;;  %v2910_v39 = vpop.eup %1817  ;;  %vm946_vm9 = vweird.f32 %v2907_v40 }
 0x160   :  { %1428 = vst [vmem:[#allocation1 + $0x5] ss:$9 sm:$0xff] %v1213_v32  ;;  %v940_v32 = vmul.f32 %v2907_v40, %v2881_v1  ;;  %v665_v8 = vmul.f32 %v2910_v39, %v2887_v53  ;;  %vm671_vm11 = vweird.f32 %v2910_v39  ;;  %vm2965_vm12 = vmor %vm945_vm8, %vm946_vm9 }
 0x161   :  { %1429 = vst [vmem:[#allocation1 + $0x6] ss:$9 sm:$0xff] %v1214_v59  ;;  %v1224_v59 = vperm.slane %v1104_v46, 0  ;;  %v1225_v28 = vperm.slane %v1104_v46, 1  ;;  %v1226_v13 = vperm.slane %v1104_v46, 2  ;;  %v1227_v36 = vperm.slane %v1104_v46, 3  ;;  %vm2972_vm13 = vmor %vm670_vm10, %vm671_vm11 }
 0x162   :  { %1430 = vst [vmem:[#allocation1 + $0x7] ss:$9 sm:$0xff] %v1215_v43  ;;  %v941_v62 = vmul.f32 %v2907_v40, %v940_v32  ;;  %v1228_v19 = vperm.slane %v1104_v46, 4  ;;  %v1230_v45 = vperm.slane %v1104_v46, 6  ;;  %v2949_v5 = vpop.eup %1819 }
 0x163   :  { %v2952_v4 = vpop.eup %1821  ;;  %vm956_vm15 = vweird.f32 %v2949_v5 }
 0x164   :  { %v942_v11 = vmul.f32 0.5, %v941_v62  ;;  %v675_v26 = vmul.f32 %v2952_v4, %v2933_v41  ;;  %vm681_vm1 = vweird.f32 %v2952_v4  ;;  %vm3005_vm2 = vmor %vm955_vm14, %vm956_vm15 }
 0x165   :  { %vm3012_vm3 = vmor %vm680_vm0, %vm681_vm1 }
 0x166   :  { %v943_v60 = vsub.f32 1.5, %v942_v11 }
 0x169   :  { %v1431_v14 = vld [vmem:[#allocation1] sm:$0xff] }
 0x16a   :  { %1432 = vst [vmem:[#allocation1] ss:$9 sm:$0xff] %v1216_v52  ;;  %1601 = vperm.xlu2 %1766, %v1431_v14   ;;  %v2938_v52 = vpop.xlane.xlu1 %380  ;;  %v666_v14 = vmul.f32 %v2910_v39, %v665_v8 }
 0x16b   :  { %1433 = vst [vmem:[#allocation1 + $0x1] ss:$9 sm:$0xff] %v1217_v22  ;;  %v1229_v22 = vperm.slane %v1104_v46, 5 }
 0x16c   :  { %1434 = vst [vmem:[#allocation1 + $0x2] ss:$9 sm:$0xff] %v1218_v9  ;;  %v1080_v9 = vmul.f32 %v938_v6, %v663_v0  ;;  %v667_v15 = vmul.f32 0.5, %v666_v14 }
 0x16d   :  { %1435 = vst [vmem:[#allocation1 + $0x3] ss:$9 sm:$0xff] %v1219_v56  ;;  %v1231_v56 = vperm.slane %v1104_v46, 7 }
 0x16e   :  { %1436 = vst [vmem:[#allocation1 + $0x4] ss:$9 sm:$0xff] %v1220_v10  ;;  %v1105_v10 = vmul.f32 %v1080_v9, %v2430_v25  ;;  %v944_v25 = vmul.f32 %v2907_v40, %v943_v60 }
 0x16f   :  { %1437 = vst [vmem:[#allocation1 + $0x5] ss:$9 sm:$0xff] %v1221_v16  ;;  %v668_v16 = vsub.f32 1.5, %v667_v15 }
 0x170   :  { %1438 = vst [vmem:[#allocation1 + $0x6] ss:$9 sm:$0xff] %v1222_v20  ;;  %v950_v20 = vmul.f32 %v2949_v5, %v2925_v55  ;;  %v1233_v17 = vperm.slane %v1105_v10, 1  ;;  %v1234_v48 = vperm.slane %v1105_v10, 2  ;;  %v1235_v32 = vperm.slane %v1105_v10, 3 }
 0x171   :  { %1439 = vst [vmem:[#allocation1 + $0x7] ss:$9 sm:$0xff] %v1223_v44  ;;  %v1232_v44 = vperm.slane %v1105_v10, 0  ;;  %v669_v46 = vmul.f32 %v2910_v39, %v668_v16  ;;  %v948_v8 = vsel %vm2965_vm12, %v2907_v40, %v944_v25  ;;  %v1237_v49 = vperm.slane %v1105_v10, 5  ;;  %v2989_v40 = vpop.xlane.xlu0 %383 }
 0x172   :  { %v488_v51 = vpop.xlane.xlu1 %487  ;;  %v951_v47 = vmul.f32 %v2949_v5, %v950_v20  ;;  %v1239_v31 = vperm.slane %v1105_v10, 7  ;;  %v3017_v16 = vmax.f32 %v2817_v54, 1e-16 }
 0x173   :  { %v2969_v27 = vmax.f32 %v488_v51, 1e-16  ;;  %v673_v58 = vsel %vm2972_vm13, %v2910_v39, %v669_v46 }
 0x174   :  { %v952_v42 = vmul.f32 0.5, %v951_v47  ;;  %vm700_vm12 = vweird.f32 %v3017_v16 }
 0x175   :  { %1823 = vrsqrt.f32 %v2969_v27  ;;  %vm965_vm4 = vweird.f32 %v2969_v27 }
 0x176   :  { %1825 = vrsqrt.f32 %v2977_v7 }
 0x178   :  { %v1440_v43 = vld [vmem:[#allocation1] sm:$0xff] }
 0x179   :  { %1441 = vst [vmem:[#allocation1] ss:$9 sm:$0xff] %v1224_v59  ;;  %1604 = vperm.xlu1 %1765, %v1440_v43   ;;  %v1236_v59 = vperm.slane %v1105_v10, 4  ;;  %v676_v43 = vmul.f32 %v2952_v4, %v675_v26 }
 0x17a   :  { %1442 = vst [vmem:[#allocation1 + $0x1] ss:$9 sm:$0xff] %v1225_v28  ;;  %v1238_v28 = vperm.slane %v1105_v10, 6 }
 0x17b   :  { %1443 = vst [vmem:[#allocation1 + $0x2] ss:$9 sm:$0xff] %v1226_v13  ;;  %v1081_v13 = vmul.f32 %v948_v8, %v673_v58  ;;  %v2991_v62 = vpop.eup %1823 }
 0x17c   :  { %1444 = vst [vmem:[#allocation1 + $0x3] ss:$9 sm:$0xff] %v1227_v36  ;;  %v677_v36 = vmul.f32 0.5, %v676_v43  ;;  %v2994_v14 = vpop.eup %1825  ;;  %v960_v0 = vmul.f32 %v2991_v62, %v2969_v27  ;;  %vm966_vm5 = vweird.f32 %v2991_v62 }
 0x17d   :  { %1445 = vst [vmem:[#allocation1 + $0x4] ss:$9 sm:$0xff] %v1228_v19  ;;  %v1106_v6 = vmul.f32 %v1081_v13, %v2452_v2  ;;  %v953_v19 = vsub.f32 1.5, %v952_v42  ;;  %v685_v2 = vmul.f32 %v2994_v14, %v2977_v7  ;;  %vm691_vm7 = vweird.f32 %v2994_v14  ;;  %vm3045_vm8 = vmor %vm965_vm4, %vm966_vm5 }
 0x17e   :  { %1446 = vst [vmem:[#allocation1 + $0x5] ss:$9 sm:$0xff] %v1229_v22  ;;  %v678_v39 = vsub.f32 1.5, %v677_v36  ;;  %v491_v22 = vpop.xlane.xlu1 %490  ;;  %v961_v20 = vmul.f32 %v2991_v62, %v960_v0  ;;  %vm3052_vm9 = vmor %vm690_vm6, %vm691_vm7 }
 0x17f   :  { %1447 = vst [vmem:[#allocation1 + $0x6] ss:$9 sm:$0xff] %v1230_v45  ;;  %v1240_v45 = vperm.slane %v1106_v6, 0  ;;  %v954_v9 = vmul.f32 %v2949_v5, %v953_v19  ;;  %v1241_v11 = vperm.slane %v1106_v6, 1  ;;  %v3009_v15 = vmax.f32 %v491_v22, 1e-16 }
 0x180   :  { %1448 = vst [vmem:[#allocation1 + $0x7] ss:$9 sm:$0xff] %v1231_v56  ;;  %v679_v10 = vmul.f32 %v2952_v4, %v678_v39  ;;  %v1242_v60 = vperm.slane %v1106_v6, 2  ;;  %v1243_v51 = vperm.slane %v1106_v6, 3  ;;  %v1244_v25 = vperm.slane %v1106_v6, 4 }
 0x181   :  { %v958_v26 = vsel %vm3005_vm2, %v2949_v5, %v954_v9  ;;  %1827 = vrsqrt.f32 %v3009_v15  ;;  %v1246_v35 = vperm.slane %v1106_v6, 6  ;;  %v1247_v46 = vperm.slane %v1106_v6, 7 }
 0x182   :  { %v683_v54 = vsel %vm3012_vm3, %v2952_v4, %v679_v10  ;;  %1829 = vrsqrt.f32 %v3017_v16  ;;  %v962_v53 = vmul.f32 0.5, %v961_v20  ;;  %v3057_v19 = vmax.f32 %v2872_v57, 1e-16 }
 0x183   :  { %vm975_vm10 = vweird.f32 %v3009_v15 }
 0x184   :  { %vm710_vm2 = vweird.f32 %v3057_v19 }
 0x187   :  { %v1449_v1 = vld [vmem:[#allocation1] sm:$0xff] }
 0x188   :  { %1450 = vst [vmem:[#allocation1] ss:$9 sm:$0xff] %v1232_v44  ;;  %1607 = vperm.xlu0 %1764, %v1449_v1   ;;  %v3020_v44 = vpop.xlane.xlu0 %389  ;;  %v1245_v1 = vperm.slane %v1106_v6, 5 }
 0x189   :  { %1451 = vst [vmem:[#allocation1 + $0x1] ss:$9 sm:$0xff] %v1233_v17  ;;  %v686_v17 = vmul.f32 %v2994_v14, %v685_v2 }
 0x18a   :  { %1452 = vst [vmem:[#allocation1 + $0x2] ss:$9 sm:$0xff] %v1234_v48  ;;  %v1082_v48 = vmul.f32 %v958_v26, %v683_v54  ;;  %v497_v26 = vpop.xlane.xlu1 %496 }
 0x18b   :  { %1453 = vst [vmem:[#allocation1 + $0x3] ss:$9 sm:$0xff] %v1235_v32  ;;  %v687_v5 = vmul.f32 0.5, %v686_v17  ;;  %v3031_v32 = vpop.eup %1827 }
 0x18c   :  { %1454 = vst [vmem:[#allocation1 + $0x4] ss:$9 sm:$0xff] %v1236_v59  ;;  %v1107_v47 = vmul.f32 %v1082_v48, %v2450_v50  ;;  %v963_v59 = vsub.f32 1.5, %v962_v53  ;;  %v3034_v8 = vpop.eup %1829  ;;  %vm976_vm11 = vweird.f32 %v3031_v32  ;;  %v3089_v48 = vmax.f32 %v497_v26, 1e-16 }
 0x18d   :  { %1455 = vst [vmem:[#allocation1 + $0x5] ss:$9 sm:$0xff] %v1237_v49  ;;  %v688_v43 = vsub.f32 1.5, %v687_v5  ;;  %v970_v49 = vmul.f32 %v3031_v32, %v3009_v15  ;;  %v695_v50 = vmul.f32 %v3034_v8, %v3017_v16  ;;  %vm701_vm13 = vweird.f32 %v3034_v8  ;;  %vm3085_vm14 = vmor %vm975_vm10, %vm976_vm11 }
 0x18e   :  { %1456 = vst [vmem:[#allocation1 + $0x6] ss:$9 sm:$0xff] %v1238_v28  ;;  %v1248_v58 = vperm.slane %v1107_v47, 0  ;;  %v964_v28 = vmul.f32 %v2991_v62, %v963_v59  ;;  %v1249_v13 = vperm.slane %v1107_v47, 1  ;;  %v1250_v6 = vperm.slane %v1107_v47, 2  ;;  %vm3092_vm15 = vmor %vm700_vm12, %vm701_vm13 }
 0x18f   :  { %1457 = vst [vmem:[#allocation1 + $0x7] ss:$9 sm:$0xff] %v1239_v31  ;;  %v689_v36 = vmul.f32 %v2994_v14, %v688_v43  ;;  %v1251_v39 = vperm.slane %v1107_v47, 3  ;;  %v971_v22 = vmul.f32 %v3031_v32, %v970_v49  ;;  %v1252_v0 = vperm.slane %v1107_v47, 4 }
 0x190   :  { %v494_v4 = vpop.xlane.xlu0 %493  ;;  %v696_v9 = vmul.f32 %v3034_v8, %v695_v50  ;;  %v1253_v2 = vperm.slane %v1107_v47, 5  ;;  %vm995_vm6 = vweird.f32 %v3089_v48 }
 0x191   :  { %v3049_v42 = vmax.f32 %v494_v4, 1e-16  ;;  %v693_v57 = vsel %vm3052_vm9, %v2994_v14, %v689_v36  ;;  %v972_v10 = vmul.f32 0.5, %v971_v22 }
 0x193   :  { %1831 = vrsqrt.f32 %v3049_v42  ;;  %v973_v20 = vsub.f32 1.5, %v972_v10  ;;  %vm985_vm0 = vweird.f32 %v3049_v42 }
 0x194   :  { %1833 = vrsqrt.f32 %v3057_v19 }
 0x195   :  { %v974_v54 = vmul.f32 %v3031_v32, %v973_v20  ;;  %1835 = vrsqrt.f32 %v3089_v48 }
 0x196   :  { %v1458_v56 = vld [vmem:[#allocation1] sm:$0xff] }
 0x197   :  { %1459 = vst [vmem:[#allocation1] ss:$9 sm:$0xff] %v1240_v45  ;;  %1610 = vperm.xlu2 %1766, %v1458_v56   ;;  %v968_v45 = vsel %vm3045_vm8, %v2991_v62, %v964_v28  ;;  %v1254_v56 = vperm.slane %v1107_v47, 6  ;;  %v3069_v62 = vpop.xlane.xlu2 %386 }
 0x198   :  { %1460 = vst [vmem:[#allocation1 + $0x1] ss:$9 sm:$0xff] %v1241_v11  ;;  %v1255_v11 = vperm.slane %v1107_v47, 7  ;;  %v1083_v55 = vmul.f32 %v968_v45, %v693_v57  ;;  %v3097_v47 = vmax.f32 %v2936_v63, 1e-16 }
 0x199   :  { %1461 = vst [vmem:[#allocation1 + $0x2] ss:$9 sm:$0xff] %v1242_v60  ;;  %v697_v60 = vmul.f32 0.5, %v696_v9  ;;  %v3071_v41 = vpop.eup %1831 }
 0x19a   :  { %1462 = vst [vmem:[#allocation1 + $0x3] ss:$9 sm:$0xff] %v1243_v51  ;;  %v1108_v51 = vmul.f32 %v1083_v55, %v2448_v23  ;;  %v980_v17 = vmul.f32 %v3071_v41, %v3049_v42  ;;  %1837 = vrsqrt.f32 %v3097_v47  ;;  %vm986_vm1 = vweird.f32 %v3071_v41 }
 0x19b   :  { %1463 = vst [vmem:[#allocation1 + $0x4] ss:$9 sm:$0xff] %v1244_v25  ;;  %v3074_v25 = vpop.eup %1833  ;;  %v698_v14 = vsub.f32 1.5, %v697_v60  ;;  %vm3127_vm4 = vmor %vm985_vm0, %vm986_vm1  ;;  %v3137_v60 = vmax.f32 %v2905_v34, 1e-16  ;;  %vm720_vm8 = vweird.f32 %v3097_v47 }
 0x19c   :  { %1464 = vst [vmem:[#allocation1 + $0x5] ss:$9 sm:$0xff] %v1245_v1  ;;  %v1256_v1 = vperm.slane %v1108_v51, 0  ;;  %v705_v23 = vmul.f32 %v3074_v25, %v3057_v19  ;;  %v1258_v5 = vperm.slane %v1108_v51, 2  ;;  %v1259_v59 = vperm.slane %v1108_v51, 3 }
 0x19d   :  { %1465 = vst [vmem:[#allocation1 + $0x6] ss:$9 sm:$0xff] %v1246_v35  ;;  %v699_v53 = vmul.f32 %v3034_v8, %v698_v14  ;;  %v981_v4 = vmul.f32 %v3071_v41, %v980_v17  ;;  %v1260_v49 = vperm.slane %v1108_v51, 4  ;;  %v1261_v50 = vperm.slane %v1108_v51, 5 }
 0x19e   :  { %1466 = vst [vmem:[#allocation1 + $0x7] ss:$9 sm:$0xff] %v1247_v46  ;;  %v1257_v46 = vperm.slane %v1108_v51, 1  ;;  %v706_v28 = vmul.f32 %v3074_v25, %v705_v23  ;;  %vm711_vm3 = vweird.f32 %v3074_v25 }
 0x19f   :  { %v3099_v43 = vpop.xlane.xlu2 %392  ;;  %v703_v63 = vsel %vm3092_vm15, %v3034_v8, %v699_v53  ;;  %v982_v36 = vmul.f32 0.5, %v981_v4  ;;  %vm3132_vm5 = vmor %vm710_vm2, %vm711_vm3 }
 0x1a5   :  { %v1467_v31 = vld [vmem:[#allocation1] sm:$0xff] }
 0x1a6   :  { %1468 = vst [vmem:[#allocation1] ss:$9 sm:$0xff] %v1248_v58  ;;  %1613 = vperm.xlu1 %1765, %v1467_v31   ;;  %v978_v58 = vsel %vm3085_vm14, %v3031_v32, %v974_v54  ;;  %v1262_v31 = vperm.slane %v1108_v51, 6  ;;  %v707_v32 = vmul.f32 0.5, %v706_v28  ;;  %vm730_vm14 = vweird.f32 %v3137_v60 }
 0x1a7   :  { %1469 = vst [vmem:[#allocation1 + $0x1] ss:$9 sm:$0xff] %v1249_v13  ;;  %v1263_v13 = vperm.slane %v1108_v51, 7  ;;  %v1084_v27 = vmul.f32 %v978_v58, %v703_v63  ;;  %v500_v8 = vpop.xlane.xlu2 %499 }
 0x1a8   :  { %1470 = vst [vmem:[#allocation1 + $0x2] ss:$9 sm:$0xff] %v1250_v6  ;;  %v3111_v6 = vpop.eup %1835 }
 0x1a9   :  { %1471 = vst [vmem:[#allocation1 + $0x3] ss:$9 sm:$0xff] %v1251_v39  ;;  %v1109_v7 = vmul.f32 %v1084_v27, %v2470_v38  ;;  %v983_v39 = vsub.f32 1.5, %v982_v36  ;;  %v3114_v22 = vpop.eup %1837  ;;  %v990_v45 = vmul.f32 %v3111_v6, %v3089_v48  ;;  %vm996_vm7 = vweird.f32 %v3111_v6 }
 0x1aa   :  { %1472 = vst [vmem:[#allocation1 + $0x4] ss:$9 sm:$0xff] %v1252_v0  ;;  %v708_v0 = vsub.f32 1.5, %v707_v32  ;;  %v715_v38 = vmul.f32 %v3114_v22, %v3097_v47  ;;  %vm721_vm9 = vweird.f32 %v3114_v22  ;;  %vm3163_vm10 = vmor %vm995_vm6, %vm996_vm7  ;;  %v3175_v27 = vmax.f32 %v2956_v12, 1e-16 }
 0x1ab   :  { %1473 = vst [vmem:[#allocation1 + $0x5] ss:$9 sm:$0xff] %v1253_v2  ;;  %v1264_v9 = vperm.slane %v1109_v7, 0  ;;  %v984_v2 = vmul.f32 %v3071_v41, %v983_v39  ;;  %v1266_v10 = vperm.slane %v1109_v7, 2  ;;  %v1267_v51 = vperm.slane %v1109_v7, 3  ;;  %vm3170_vm11 = vmor %vm720_vm8, %vm721_vm9 }
 0x1ac   :  { %1474 = vst [vmem:[#allocation1 + $0x6] ss:$9 sm:$0xff] %v1254_v56  ;;  %v1265_v56 = vperm.slane %v1109_v7, 1  ;;  %v709_v55 = vmul.f32 %v3074_v25, %v708_v0  ;;  %v991_v20 = vmul.f32 %v3111_v6, %v990_v45  ;;  %v1268_v14 = vperm.slane %v1109_v7, 4 }
 0x1ad   :  { %1475 = vst [vmem:[#allocation1 + $0x7] ss:$9 sm:$0xff] %v1255_v11  ;;  %v3125_v11 = vmax.f32 %v500_v8, 1e-16  ;;  %v988_v26 = vsel %vm3127_vm4, %v3071_v41, %v984_v2  ;;  %v716_v17 = vmul.f32 %v3114_v22, %v715_v38  ;;  %v1270_v54 = vperm.slane %v1109_v7, 6 }
 0x1ae   :  { %v713_v34 = vsel %vm3132_vm5, %v3074_v25, %v709_v55  ;;  %v1271_v23 = vperm.slane %v1109_v7, 7  ;;  %v503_v25 = vpop.xlane.xlu0 %502  ;;  %vm740_vm4 = vweird.f32 %v3175_v27 }
 0x1af   :  { %1839 = vrsqrt.f32 %v3125_v11  ;;  %v717_v41 = vmul.f32 0.5, %v716_v17  ;;  %v3167_v63 = vmax.f32 %v503_v25, 1e-16  ;;  %vm1005_vm12 = vweird.f32 %v3125_v11 }
 0x1b0   :  { %1841 = vrsqrt.f32 %v3137_v60 }
 0x1b1   :  { %1843 = vrsqrt.f32 %v3167_v63  ;;  %vm1015_vm2 = vweird.f32 %v3167_v63 }
 0x1b2   :  { %1845 = vrsqrt.f32 %v3175_v27 }
 0x1b4   :  { %v1476_v35 = vld [vmem:[#allocation1] sm:$0xff] }
 0x1b5   :  { %1477 = vst [vmem:[#allocation1] ss:$9 sm:$0xff] %v1256_v1  ;;  %1616 = vperm.xlu0 %1764, %v1476_v35   ;;  %v1269_v1 = vperm.slane %v1109_v7, 5  ;;  %v992_v35 = vmul.f32 0.5, %v991_v20  ;;  %v3149_v15 = vpop.eup %1839 }
 0x1b6   :  { %1478 = vst [vmem:[#allocation1 + $0x1] ss:$9 sm:$0xff] %v1257_v46  ;;  %v1085_v46 = vmul.f32 %v988_v26, %v713_v34  ;;  %v3152_v16 = vpop.eup %1841  ;;  %v1000_v4 = vmul.f32 %v3149_v15, %v3125_v11  ;;  %vm1006_vm13 = vweird.f32 %v3149_v15 }
 0x1b7   :  { %1479 = vst [vmem:[#allocation1 + $0x2] ss:$9 sm:$0xff] %v1258_v5  ;;  %v993_v53 = vsub.f32 1.5, %v992_v35  ;;  %vm731_vm15 = vweird.f32 %v3152_v16  ;;  %vm3201_vm0 = vmor %vm1005_vm12, %vm1006_vm13 }
 0x1b8   :  { %1480 = vst [vmem:[#allocation1 + $0x3] ss:$9 sm:$0xff] %v1259_v59  ;;  %v1110_v5 = vmul.f32 %v1085_v46, %v2468_v33  ;;  %v718_v59 = vsub.f32 1.5, %v717_v41  ;;  %v725_v33 = vmul.f32 %v3152_v16, %v3137_v60  ;;  %v1001_v36 = vmul.f32 %v3149_v15, %v1000_v4  ;;  %vm3208_vm1 = vmor %vm730_vm14, %vm731_vm15 }
 0x1b9   :  { %1481 = vst [vmem:[#allocation1 + $0x4] ss:$9 sm:$0xff] %v1260_v49  ;;  %v994_v49 = vmul.f32 %v3111_v6, %v993_v53 }
 0x1ba   :  { %1482 = vst [vmem:[#allocation1 + $0x5] ss:$9 sm:$0xff] %v1261_v50  ;;  %v1272_v58 = vperm.slane %v1110_v5, 0  ;;  %v1273_v48 = vperm.slane %v1110_v5, 1  ;;  %v1275_v32 = vperm.slane %v1110_v5, 3  ;;  %v1276_v39 = vperm.slane %v1110_v5, 4 }
 0x1bb   :  { %1483 = vst [vmem:[#allocation1 + $0x6] ss:$9 sm:$0xff] %v1262_v31  ;;  %v719_v31 = vmul.f32 %v3114_v22, %v718_v59  ;;  %v998_v7 = vsel %vm3163_vm10, %v3111_v6, %v994_v49  ;;  %v726_v0 = vmul.f32 %v3152_v16, %v725_v33  ;;  %v1277_v8 = vperm.slane %v1110_v5, 5 }
 0x1bc   :  { %1484 = vst [vmem:[#allocation1 + $0x7] ss:$9 sm:$0xff] %v1263_v13  ;;  %v1274_v13 = vperm.slane %v1110_v5, 2  ;;  %v1278_v45 = vperm.slane %v1110_v5, 6  ;;  %v1279_v38 = vperm.slane %v1110_v5, 7 }
 0x1bd   :  { %v723_v12 = vsel %vm3170_vm11, %v3114_v22, %v719_v31  ;;  %v727_v6 = vmul.f32 0.5, %v726_v0  ;;  %v506_v22 = vpop.xlane.xlu1 %505 }
 0x1be   :  { %v1086_v2 = vmul.f32 %v998_v7, %v723_v12  ;;  %v3205_v17 = vmax.f32 %v506_v22, 1e-16 }
 0x1c0   :  { %v1111_v42 = vmul.f32 %v1086_v2, %v2466_v61  ;;  %1847 = vrsqrt.f32 %v3205_v17  ;;  %vm1025_vm8 = vweird.f32 %v3205_v17 }
 0x1c2   :  { %v1280_v20 = vperm.slane %v1111_v42, 0  ;;  %v1281_v11 = vperm.slane %v1111_v42, 1  ;;  %v1282_v34 = vperm.slane %v1111_v42, 2  ;;  %v1284_v41 = vperm.slane %v1111_v42, 4 }
 0x1c3   :  { %v1485_v57 = vld [vmem:[#allocation1] sm:$0xff]  ;;  %v1285_v5 = vperm.slane %v1111_v42, 5  ;;  %v1286_v59 = vperm.slane %v1111_v42, 6  ;;  %v1287_v4 = vperm.slane %v1111_v42, 7 }
 0x1c4   :  { %1486 = vst [vmem:[#allocation1] ss:$9 sm:$0xff] %v1264_v9  ;;  %1619 = vperm.xlu2 %1766, %v1485_v57   ;;  %v1002_v9 = vmul.f32 0.5, %v1001_v36  ;;  %v3187_v57 = vpop.eup %1843 }
 0x1c5   :  { %1487 = vst [vmem:[#allocation1 + $0x1] ss:$9 sm:$0xff] %v1265_v56  ;;  %v3190_v55 = vpop.eup %1845  ;;  %v1010_v19 = vmul.f32 %v3187_v57, %v3167_v63  ;;  %vm1016_vm3 = vweird.f32 %v3187_v57 }
 0x1c6   :  { %1488 = vst [vmem:[#allocation1 + $0x2] ss:$9 sm:$0xff] %v1266_v10  ;;  %v1003_v56 = vsub.f32 1.5, %v1002_v9  ;;  %v728_v10 = vsub.f32 1.5, %v727_v6  ;;  %v735_v61 = vmul.f32 %v3190_v55, %v3175_v27  ;;  %vm741_vm5 = vweird.f32 %v3190_v55  ;;  %vm3241_vm6 = vmor %vm1015_vm2, %vm1016_vm3 }
 0x1c7   :  { %1489 = vst [vmem:[#allocation1 + $0x3] ss:$9 sm:$0xff] %v1267_v51  ;;  %v1011_v35 = vmul.f32 %v3187_v57, %v1010_v19  ;;  %vm3246_vm7 = vmor %vm740_vm4, %vm741_vm5 }
 0x1c8   :  { %1490 = vst [vmem:[#allocation1 + $0x4] ss:$9 sm:$0xff] %v1268_v14  ;;  %v1004_v51 = vmul.f32 %v3149_v15, %v1003_v56  ;;  %v736_v53 = vmul.f32 %v3190_v55, %v735_v61 }
 0x1c9   :  { %1491 = vst [vmem:[#allocation1 + $0x5] ss:$9 sm:$0xff] %v1269_v1  ;;  %v729_v1 = vmul.f32 %v3152_v16, %v728_v10 }
 0x1ca   :  { %1492 = vst [vmem:[#allocation1 + $0x6] ss:$9 sm:$0xff] %v1270_v54  ;;  %v3213_v54 = vmax.f32 %v2938_v52, 1e-16  ;;  %v1008_v46 = vsel %vm3201_vm0, %v3149_v15, %v1004_v51  ;;  %v1012_v15 = vmul.f32 0.5, %v1011_v35  ;;  %v737_v49 = vmul.f32 0.5, %v736_v53 }
 0x1cb   :  { %1493 = vst [vmem:[#allocation1 + $0x7] ss:$9 sm:$0xff] %v1271_v23  ;;  %v1283_v23 = vperm.slane %v1111_v42, 3  ;;  %v733_v52 = vsel %vm3208_vm1, %v3152_v16, %v729_v1  ;;  %v509_v16 = vpop.xlane.xlu2 %508 }
 0x1cc   :  { %1849 = vrsqrt.f32 %v3213_v54  ;;  %v1087_v25 = vmul.f32 %v1008_v46, %v733_v52  ;;  %v3239_v7 = vmax.f32 %v509_v16, 1e-16  ;;  %vm750_vm10 = vweird.f32 %v3213_v54 }
 0x1ce   :  { %v1112_v33 = vmul.f32 %v1087_v25, %v2488_v30  ;;  %1851 = vrsqrt.f32 %v3239_v7  ;;  %vm1035_vm14 = vweird.f32 %v3239_v7 }
 0x1d0   :  { %v1289_v36 = vperm.slane %v1112_v33, 1  ;;  %v1290_v0 = vperm.slane %v1112_v33, 2  ;;  %v1291_v12 = vperm.slane %v1112_v33, 3  ;;  %v1292_v9 = vperm.slane %v1112_v33, 4 }
 0x1d1   :  { %v1293_v6 = vperm.slane %v1112_v33, 5  ;;  %v1294_v56 = vperm.slane %v1112_v33, 6  ;;  %v1295_v42 = vperm.slane %v1112_v33, 7 }
 0x1d2   :  { %v1494_v28 = vld [vmem:[#allocation1] sm:$0xff] }
 0x1d3   :  { %1495 = vst [vmem:[#allocation1] ss:$9 sm:$0xff] %v1272_v58  ;;  %1622 = vperm.xlu1 %1765, %v1494_v28   ;;  %v3225_v58 = vpop.eup %1847  ;;  %v1013_v28 = vsub.f32 1.5, %v1012_v15 }
 0x1d4   :  { %1496 = vst [vmem:[#allocation1 + $0x1] ss:$9 sm:$0xff] %v1273_v48  ;;  %v3228_v50 = vpop.eup %1849  ;;  %v738_v48 = vsub.f32 1.5, %v737_v49  ;;  %v1020_v31 = vmul.f32 %v3225_v58, %v3205_v17  ;;  %vm1026_vm9 = vweird.f32 %v3225_v58 }
 0x1d5   :  { %1497 = vst [vmem:[#allocation1 + $0x2] ss:$9 sm:$0xff] %v1274_v13  ;;  %v1288_v13 = vperm.slane %v1112_v33, 0  ;;  %v1014_v47 = vmul.f32 %v3187_v57, %v1013_v28  ;;  %v745_v30 = vmul.f32 %v3228_v50, %v3213_v54  ;;  %v3263_v19 = vpop.eup %1851  ;;  %vm751_vm11 = vweird.f32 %v3228_v50  ;;  %vm3277_vm12 = vmor %vm1025_vm8, %vm1026_vm9 }
 0x1d6   :  { %1498 = vst [vmem:[#allocation1 + $0x3] ss:$9 sm:$0xff] %v1275_v32  ;;  %vm3284_vm13 = vmor %vm750_vm10, %vm751_vm11  ;;  %vm1036_vm15 = vweird.f32 %v3263_v19 }
 0x1d7   :  { %1499 = vst [vmem:[#allocation1 + $0x4] ss:$9 sm:$0xff] %v1276_v39  ;;  %v739_v39 = vmul.f32 %v3190_v55, %v738_v48  ;;  %v1018_v2 = vsel %vm3241_vm6, %v3187_v57, %v1014_v47  ;;  %vm3315_vm2 = vmor %vm1035_vm14, %vm1036_vm15 }
 0x1d8   :  { %1500 = vst [vmem:[#allocation1 + $0x5] ss:$9 sm:$0xff] %v1277_v8  ;;  %v3251_v8 = vmax.f32 %v2989_v40, 1e-16 }
 0x1d9   :  { %1501 = vst [vmem:[#allocation1 + $0x6] ss:$9 sm:$0xff] %v1278_v45  ;;  %v1021_v45 = vmul.f32 %v3225_v58, %v1020_v31  ;;  %v743_v40 = vsel %vm3246_vm7, %v3190_v55, %v739_v39  ;;  %v512_v55 = vpop.xlane.xlu0 %511 }
 0x1da   :  { %1502 = vst [vmem:[#allocation1 + $0x7] ss:$9 sm:$0xff] %v1279_v38  ;;  %v746_v38 = vmul.f32 %v3228_v50, %v745_v30  ;;  %1853 = vrsqrt.f32 %v3251_v8  ;;  %v1088_v22 = vmul.f32 %v1018_v2, %v743_v40  ;;  %vm760_vm0 = vweird.f32 %v3251_v8 }
 0x1db   :  { %v1022_v10 = vmul.f32 0.5, %v1021_v45  ;;  %v3327_v45 = vmax.f32 %v3020_v44, 1e-16 }
 0x1dc   :  { %v747_v57 = vmul.f32 0.5, %v746_v38 }
 0x1dd   :  { %v1023_v51 = vsub.f32 1.5, %v1022_v10 }
 0x1de   :  { %v748_v14 = vsub.f32 1.5, %v747_v57 }
 0x1e0   :  { %v3266_v61 = vpop.eup %1853  ;;  %v749_v35 = vmul.f32 %v3228_v50, %v748_v14 }
 0x1e1   :  { %v1503_v26 = vld [vmem:[#allocation1] sm:$0xff]  ;;  %vm761_vm1 = vweird.f32 %v3266_v61 }
 0x1e2   :  { %1504 = vst [vmem:[#allocation1] ss:$9 sm:$0xff] %v1280_v20  ;;  %1625 = vperm.xlu0 %1764, %v1503_v26   ;;  %v1113_v20 = vmul.f32 %v1088_v22, %v2486_v37  ;;  %v1024_v26 = vmul.f32 %v3225_v58, %v1023_v51  ;;  %v755_v37 = vmul.f32 %v3266_v61, %v3251_v8  ;;  %vm3322_vm3 = vmor %vm760_vm0, %vm761_vm1 }
 0x1e3   :  { %1505 = vst [vmem:[#allocation1 + $0x1] ss:$9 sm:$0xff] %v1281_v11  ;;  %v1030_v11 = vmul.f32 %v3263_v19, %v3239_v7 }
 0x1e4   :  { %1506 = vst [vmem:[#allocation1 + $0x2] ss:$9 sm:$0xff] %v1282_v34  ;;  %v1296_v1 = vperm.slane %v1113_v20, 0  ;;  %v1297_v60 = vperm.slane %v1113_v20, 1  ;;  %v1298_v46 = vperm.slane %v1113_v20, 2  ;;  %v1028_v52 = vsel %vm3277_vm12, %v3225_v58, %v1024_v26 }
 0x1e5   :  { %1507 = vst [vmem:[#allocation1 + $0x3] ss:$9 sm:$0xff] %v1283_v23  ;;  %v3281_v23 = vmax.f32 %v512_v55, 1e-16  ;;  %v1031_v53 = vmul.f32 %v3263_v19, %v1030_v11  ;;  %v756_v25 = vmul.f32 %v3266_v61, %v755_v37  ;;  %v1302_v15 = vperm.slane %v1113_v20, 6 }
 0x1e6   :  { %1508 = vst [vmem:[#allocation1 + $0x4] ss:$9 sm:$0xff] %v1284_v41  ;;  %v3289_v41 = vmax.f32 %v3069_v62, 1e-16  ;;  %v753_v62 = vsel %vm3284_vm13, %v3228_v50, %v749_v35  ;;  %v1303_v28 = vperm.slane %v1113_v20, 7  ;;  %v515_v50 = vpop.xlane.xlu1 %514  ;;  %vm780_vm12 = vweird.f32 %v3327_v45 }
 0x1e7   :  { %1509 = vst [vmem:[#allocation1 + $0x5] ss:$9 sm:$0xff] %v1285_v5  ;;  %v1299_v5 = vperm.slane %v1113_v20, 3  ;;  %1855 = vrsqrt.f32 %v3281_v23  ;;  %v1032_v49 = vmul.f32 0.5, %v1031_v53  ;;  %v1089_v33 = vmul.f32 %v1028_v52, %v753_v62 }
 0x1e8   :  { %1510 = vst [vmem:[#allocation1 + $0x6] ss:$9 sm:$0xff] %v1286_v59  ;;  %v1300_v59 = vperm.slane %v1113_v20, 4  ;;  %1857 = vrsqrt.f32 %v3289_v41  ;;  %v757_v58 = vmul.f32 0.5, %v756_v25  ;;  %vm1045_vm4 = vweird.f32 %v3281_v23 }
 0x1e9   :  { %1511 = vst [vmem:[#allocation1 + $0x7] ss:$9 sm:$0xff] %v1287_v4  ;;  %v1301_v4 = vperm.slane %v1113_v20, 5  ;;  %v1033_v16 = vsub.f32 1.5, %v1032_v49  ;;  %v1114_v31 = vmul.f32 %v1089_v33, %v2484_v24  ;;  %vm770_vm6 = vweird.f32 %v3289_v41 }
 0x1ea   :  { %v758_v47 = vsub.f32 1.5, %v757_v58 }
 0x1eb   :  { %v1305_v7 = vperm.slane %v1114_v31, 1  ;;  %v1311_v22 = vperm.slane %v1114_v31, 7 }
 0x1ec   :  { %v759_v27 = vmul.f32 %v3266_v61, %v758_v47 }
 0x1ed   :  { %v3301_v48 = vpop.eup %1855 }
 0x1ee   :  { %v1040_v30 = vmul.f32 %v3301_v48, %v3281_v23  ;;  %v763_v44 = vsel %vm3322_vm3, %v3266_v61, %v759_v27  ;;  %v518_v61 = vpop.xlane.xlu2 %517  ;;  %vm1046_vm5 = vweird.f32 %v3301_v48 }
 0x1ef   :  { %vm3355_vm8 = vmor %vm1045_vm4, %vm1046_vm5 }
 0x1f0   :  { %v1512_v32 = vld [vmem:[#allocation1] sm:$0xff]  ;;  %v1041_v2 = vmul.f32 %v3301_v48, %v1040_v30 }
 0x1f1   :  { %1513 = vst [vmem:[#allocation1] ss:$9 sm:$0xff] %v1288_v13  ;;  %1628 = vperm.xlu2 %1766, %v1512_v32   ;;  %v3304_v13 = vpop.eup %1857  ;;  %v1304_v32 = vperm.slane %v1114_v31, 0 }
 0x1f2   :  { %1514 = vst [vmem:[#allocation1 + $0x1] ss:$9 sm:$0xff] %v1289_v36  ;;  %v1034_v36 = vmul.f32 %v3263_v19, %v1033_v16  ;;  %v765_v24 = vmul.f32 %v3304_v13, %v3289_v41  ;;  %v1042_v57 = vmul.f32 0.5, %v1041_v2  ;;  %vm771_vm7 = vweird.f32 %v3304_v13 }
 0x1f3   :  { %1515 = vst [vmem:[#allocation1 + $0x2] ss:$9 sm:$0xff] %v1290_v0  ;;  %v3319_v0 = vmax.f32 %v515_v50, 1e-16  ;;  %vm3360_vm9 = vmor %vm770_vm6, %vm771_vm7  ;;  %v3365_v41 = vmax.f32 %v3099_v43, 1e-16 }
 0x1f4   :  { %1516 = vst [vmem:[#allocation1 + $0x3] ss:$9 sm:$0xff] %v1291_v12  ;;  %v1306_v12 = vperm.slane %v1114_v31, 2  ;;  %v1038_v38 = vsel %vm3315_vm2, %v3263_v19, %v1034_v36  ;;  %v766_v40 = vmul.f32 %v3304_v13, %v765_v24  ;;  %v1043_v14 = vsub.f32 1.5, %v1042_v57 }
 0x1f5   :  { %1517 = vst [vmem:[#allocation1 + $0x4] ss:$9 sm:$0xff] %v1292_v9  ;;  %v1307_v9 = vperm.slane %v1114_v31, 3  ;;  %1859 = vrsqrt.f32 %v3319_v0  ;;  %v1090_v10 = vmul.f32 %v1038_v38, %v763_v44  ;;  %vm1055_vm10 = vweird.f32 %v3319_v0 }
 0x1f6   :  { %1518 = vst [vmem:[#allocation1 + $0x5] ss:$9 sm:$0xff] %v1293_v6  ;;  %v1308_v6 = vperm.slane %v1114_v31, 4  ;;  %1861 = vrsqrt.f32 %v3327_v45  ;;  %v767_v19 = vmul.f32 0.5, %v766_v40  ;;  %v1044_v37 = vmul.f32 %v3301_v48, %v1043_v14 }
 0x1f7   :  { %1519 = vst [vmem:[#allocation1 + $0x6] ss:$9 sm:$0xff] %v1294_v56  ;;  %v1309_v56 = vperm.slane %v1114_v31, 5  ;;  %v1115_v20 = vmul.f32 %v1090_v10, %v2506_v3  ;;  %vm790_vm2 = vweird.f32 %v3365_v41  ;;  %vm1656_vm6 = vcmask 130112  }
 0x1f8   :  { %1520 = vst [vmem:[#allocation1 + $0x7] ss:$9 sm:$0xff] %v1295_v42  ;;  %v1310_v42 = vperm.slane %v1114_v31, 6  ;;  %v768_v11 = vsub.f32 1.5, %v767_v19  ;;  %vm1660_vm7 = vcmask 195712  }
 0x1f9   :  { %v1313_v34 = vperm.slane %v1115_v20, 1  ;;  %v1315_v53 = vperm.slane %v1115_v20, 3  ;;  %v1316_v52 = vperm.slane %v1115_v20, 4  ;;  %v1318_v62 = vperm.slane %v1115_v20, 6 }
 0x1fa   :  { %v769_v35 = vmul.f32 %v3304_v13, %v768_v11 }
 0x1fb   :  { %v3339_v51 = vpop.eup %1859 }
 0x1fc   :  { %v3342_v55 = vpop.eup %1861  ;;  %v1050_v26 = vmul.f32 %v3339_v51, %v3319_v0  ;;  %v773_v43 = vsel %vm3360_vm9, %v3304_v13, %v769_v35  ;;  %vm1056_vm11 = vweird.f32 %v3339_v51  ;;  %vm1668_vm9 = vcmask 326912  }
 0x1fd   :  { %v775_v3 = vmul.f32 %v3342_v55, %v3327_v45  ;;  %vm781_vm13 = vweird.f32 %v3342_v55  ;;  %vm3391_vm14 = vmor %vm1055_vm10, %vm1056_vm11  ;;  %vm1672_vm10 = vcmask 392512   ;;  %vm1676_vm11 = vcmask 458112  }
 0x1fe   :  { %vm782_vm15 = vmor %vm780_vm12, %vm781_vm13  ;;  %vm1680_vm12 = vcmask 523712   ;;  %vm1684_vm13 = vcmask 589312  }
 0x1ff   :  { %v1521_v17 = vld [vmem:[#allocation1] sm:$0xff]  ;;  %v776_v25 = vmul.f32 %v3342_v55, %v775_v3 }
 0x200   :  { %1522 = vst [vmem:[#allocation1] ss:$9 sm:$0xff] %v1296_v1  ;;  %1631 = vperm.xlu1 %1765, %v1521_v17   ;;  %v1312_v1 = vperm.slane %v1115_v20, 0  ;;  %v3353_v17 = vmax.f32 %v518_v61, 1e-16 }
 0x201   :  { %1523 = vst [vmem:[#allocation1 + $0x1] ss:$9 sm:$0xff] %v1297_v60 }
 0x202   :  { %1524 = vst [vmem:[#allocation1 + $0x2] ss:$9 sm:$0xff] %v1298_v46  ;;  %v1314_v46 = vperm.slane %v1115_v20, 2  ;;  %1863 = vrsqrt.f32 %v3353_v17  ;;  %vm1065_vm0 = vweird.f32 %v3353_v17 }
 0x203   :  { %1525 = vst [vmem:[#allocation1 + $0x3] ss:$9 sm:$0xff] %v1299_v5  ;;  %v1051_v5 = vmul.f32 %v3339_v51, %v1050_v26  ;;  %1865 = vrsqrt.f32 %v3365_v41 }
 0x204   :  { %1526 = vst [vmem:[#allocation1 + $0x4] ss:$9 sm:$0xff] %v1300_v59  ;;  %v1048_v59 = vsel %vm3355_vm8, %v3301_v48, %v1044_v37  ;;  %vm1664_vm8 = vcmask 261312  }
 0x205   :  { %1527 = vst [vmem:[#allocation1 + $0x5] ss:$9 sm:$0xff] %v1301_v4  ;;  %v1317_v4 = vperm.slane %v1115_v20, 5  ;;  %v1052_v49 = vmul.f32 0.5, %v1051_v5  ;;  %v1091_v33 = vmul.f32 %v1048_v59, %v773_v43 }
 0x206   :  { %1528 = vst [vmem:[#allocation1 + $0x6] ss:$9 sm:$0xff] %v1302_v15  ;;  %v1319_v15 = vperm.slane %v1115_v20, 7 }
 0x207   :  { %1529 = vst [vmem:[#allocation1 + $0x7] ss:$9 sm:$0xff] %v1303_v28  ;;  %v777_v28 = vmul.f32 0.5, %v776_v25  ;;  %v1053_v48 = vsub.f32 1.5, %v1052_v49  ;;  %v1116_v16 = vmul.f32 %v1091_v33, %v2504_v21  ;;  %v1581_v25 = vpop.permute.xlu1 %1580 }
 0x208   :  { %v3377_v58 = vpop.eup %1863 }
 0x209   :  { %v3380_v31 = vpop.eup %1865  ;;  %v778_v47 = vsub.f32 1.5, %v777_v28  ;;  %v1060_v13 = vmul.f32 %v3377_v58, %v3353_v17  ;;  %v1054_v50 = vmul.f32 %v3339_v51, %v1053_v48  ;;  %v1320_v30 = vperm.slane %v1116_v16, 0 }
 0x20a   :  { %v785_v21 = vmul.f32 %v3380_v31, %v3365_v41  ;;  %v1323_v0 = vperm.slane %v1116_v16, 3  ;;  %v1325_v45 = vperm.slane %v1116_v16, 5  ;;  %v1326_v2 = vperm.slane %v1116_v16, 6 }
 0x20b   :  { %v779_v63 = vmul.f32 %v3342_v55, %v778_v47  ;;  %v1058_v27 = vsel %vm3391_vm14, %v3339_v51, %v1054_v50  ;;  %v1327_v40 = vperm.slane %v1116_v16, 7  ;;  %vm1066_vm1 = vweird.f32 %v3377_v58 }
 0x20c   :  { %v786_v8 = vmul.f32 %v3380_v31, %v785_v21  ;;  %vm791_vm3 = vweird.f32 %v3380_v31  ;;  %vm3408_vm4 = vmor %vm1065_vm0, %vm1066_vm1  ;;  %vm1688_vm14 = vcmask 654912   ;;  %vm1696_vm0 = vcmask 786112  }
 0x20d   :  { %vm792_vm5 = vmor %vm790_vm2, %vm791_vm3  ;;  %vm1700_vm1 = vcmask 851712   ;;  %vm1704_vm2 = vcmask 917312   ;;  %vm1708_vm3 = vcmask 982912  }
 0x20e   :  { %v1530_v39 = vld [vmem:[#allocation1] sm:$0xff] }
 0x20f   :  { %1531 = vst [vmem:[#allocation1] ss:$9 sm:$0xff] %v1304_v32  ;;  %1634 = vperm.xlu0 %1764, %v1530_v39   ;;  %v1321_v32 = vperm.slane %v1116_v16, 1  ;;  %v1061_v39 = vmul.f32 %v3377_v58, %v1060_v13  ;;  %v1590_v43 = vpop.permute.xlu1 %1589 }
 0x210   :  { %1532 = vst [vmem:[#allocation1 + $0x1] ss:$9 sm:$0xff] %v1305_v7  ;;  %v1322_v7 = vperm.slane %v1116_v16, 2 }
 0x211   :  { %1533 = vst [vmem:[#allocation1 + $0x2] ss:$9 sm:$0xff] %v1306_v12  ;;  %v1324_v12 = vperm.slane %v1116_v16, 4  ;;  %v1062_v38 = vmul.f32 0.5, %v1061_v39  ;;  %v1651_v16 = vlaneseq }
 0x212   :  { %1534 = vst [vmem:[#allocation1 + $0x3] ss:$9 sm:$0xff] %v1307_v9  ;;  %v783_v9 = vsel %vm782_vm15, %v3342_v55, %v779_v63  ;;  %vm1692_vm15 = vcmask 720512  }
 0x213   :  { %1535 = vst [vmem:[#allocation1 + $0x4] ss:$9 sm:$0xff] %v1308_v6  ;;  %v1092_v6 = vmul.f32 %v1058_v27, %v783_v9  ;;  %v1063_v44 = vsub.f32 1.5, %v1062_v38  ;;  %v3431_v50 = vand.u32 127, %v1651_v16 }
 0x214   :  { %1536 = vst [vmem:[#allocation1 + $0x5] ss:$9 sm:$0xff] %v1309_v56  ;;  %v787_v56 = vmul.f32 0.5, %v786_v8 }
 0x215   :  { %1537 = vst [vmem:[#allocation1 + $0x6] ss:$9 sm:$0xff] %v1310_v42  ;;  %v1117_v42 = vmul.f32 %v1092_v6, %v2502_v29  ;;  %v3441_v39 = vadd.s32 4294967264, %v3431_v50  ;;  %v1670_v6 = vadd.s32 4294967256, %v3431_v50 }
 0x216   :  { %1538 = vst [vmem:[#allocation1 + $0x7] ss:$9 sm:$0xff] %v1311_v22  ;;  %v788_v10 = vsub.f32 1.5, %v787_v56  ;;  %v1064_v22 = vmul.f32 %v3377_v58, %v1063_v44 }
 0x217   :  { %v1328_v57 = vperm.slane %v1117_v42, 0  ;;  %v1329_v51 = vperm.slane %v1117_v42, 1  ;;  %v1330_v14 = vperm.slane %v1117_v42, 2  ;;  %v1331_v55 = vperm.slane %v1117_v42, 3  ;;  %v1596_v49 = vpop.permute.xlu1 %1595 }
 0x218   :  { %v789_v29 = vmul.f32 %v3380_v31, %v788_v10  ;;  %v1068_v11 = vsel %vm3408_vm4, %v3377_v58, %v1064_v22  ;;  %v1332_v61 = vperm.slane %v1117_v42, 4  ;;  %v1333_v26 = vperm.slane %v1117_v42, 5 }
 0x219   :  { %v1334_v37 = vperm.slane %v1117_v42, 6  ;;  %v1667_v9 = vperm.slane %v1590_v43, %v3441_v39  ;;  %v3455_v22 = vadd.s32 4294967232, %v3431_v50  ;;  %vm1712_vm4 = vcmask 1048512  }
 0x21d   :  { %v1539_v23 = vld [vmem:[#allocation1] sm:$0xff] }
 0x21e   :  { %1637 = vperm.xlu2 %1766, %v1539_v23   ;;  %1540 = vst [vmem:[#allocation1] ss:$9 sm:$0xff] %v1312_v1  ;;  %v793_v1 = vsel %vm792_vm5, %v3380_v31, %v789_v29  ;;  %v1690_v29 = vadd.s32 4294967216, %v3431_v50  ;;  %vm1732_vm5 = vcmask 1040384  }
 0x21f   :  { %1541 = vst [vmem:[#allocation1 + $0x1] ss:$9 sm:$0xff] %v1313_v34  ;;  %v1093_v3 = vmul.f32 %v1068_v11, %v793_v1  ;;  %v1335_v34 = vperm.slane %v1117_v42, 7  ;;  %v3420_v58 = vpop.permute.xlu1 %1604 }
 0x220   :  { %1542 = vst [vmem:[#allocation1 + $0x2] ss:$9 sm:$0xff] %v1314_v46 }
 0x221   :  { %1543 = vst [vmem:[#allocation1 + $0x3] ss:$9 sm:$0xff] %v1315_v53  ;;  %v1118_v17 = vmul.f32 %v1093_v3, %v2520_v18  ;;  %v1584_v18 = vpop.permute.xlu2 %1583 }
 0x222   :  { %1544 = vst [vmem:[#allocation1 + $0x4] ss:$9 sm:$0xff] %v1316_v52 }
 0x223   :  { %1545 = vst [vmem:[#allocation1 + $0x5] ss:$9 sm:$0xff] %v1317_v4  ;;  %v1336_v60 = vperm.slane %v1118_v17, 0  ;;  %v1337_v23 = vperm.slane %v1118_v17, 1  ;;  %v1338_v46 = vperm.slane %v1118_v17, 2  ;;  %v1339_v54 = vperm.slane %v1118_v17, 3 }
 0x224   :  { %1546 = vst [vmem:[#allocation1 + $0x6] ss:$9 sm:$0xff] %v1318_v62  ;;  %v1340_v41 = vperm.slane %v1118_v17, 4  ;;  %v1341_v53 = vperm.slane %v1118_v17, 5  ;;  %v1342_v5 = vperm.slane %v1118_v17, 6  ;;  %v1343_v52 = vperm.slane %v1118_v17, 7  ;;  %v1578_v62 = vpop.permute.xlu0 %1577 }
 0x225   :  { %1547 = vst [vmem:[#allocation1 + $0x7] ss:$9 sm:$0xff] %v1319_v15  ;;  %v1694_v17 = vadd.s32 4294967208, %v3431_v50 }
 0x227   :  { %v3426_v47 = vpop.permute.xlu1 %1613 }
 0x229   :  { %v1587_v4 = vpop.permute.xlu2 %1586 }
 0x22c   :  { %v1548_v24 = vld [vmem:[#allocation1] sm:$0xff]  ;;  %v1599_v33 = vpop.permute.xlu0 %1598 }
 0x22d   :  { %1640 = vperm.xlu1 %1765, %v1548_v24   ;;  %1549 = vst [vmem:[#allocation1] ss:$9 sm:$0xff] %v1320_v30  ;;  %v1654_v30 = vadd.s32 4294967288, %v3431_v50  ;;  %v1658_v24 = vadd.s32 4294967280, %v3431_v50 }
 0x22e   :  { %1550 = vst [vmem:[#allocation1 + $0x1] ss:$9 sm:$0xff] %v1321_v32 }
 0x22f   :  { %1551 = vst [vmem:[#allocation1 + $0x2] ss:$9 sm:$0xff] %v1322_v7  ;;  %v1655_v36 = vperm.slane %v1581_v25, %v1654_v30  ;;  %v1653_v7 = vperm.slane %v1578_v62, %v3431_v50 }
 0x230   :  { %1552 = vst [vmem:[#allocation1 + $0x3] ss:$9 sm:$0xff] %v1323_v0  ;;  %v1662_v0 = vadd.s32 4294967272, %v3431_v50 }
 0x231   :  { %1553 = vst [vmem:[#allocation1 + $0x4] ss:$9 sm:$0xff] %v1324_v12  ;;  %v1593_v15 = vpop.permute.xlu2 %1592  ;;  %v1657_v27 = vsel %vm1656_vm6, %v1655_v36, %v1653_v7  ;;  %v1659_v12 = vperm.slane %v1584_v18, %v1658_v24 }
 0x232   :  { %1554 = vst [vmem:[#allocation1 + $0x5] ss:$9 sm:$0xff] %v1325_v45  ;;  %v1663_v38 = vperm.slane %v1587_v4, %v1662_v0  ;;  %v1671_v19 = vperm.slane %v1593_v15, %v1670_v6 }
 0x233   :  { %1555 = vst [vmem:[#allocation1 + $0x6] ss:$9 sm:$0xff] %v1326_v2  ;;  %v1661_v45 = vsel %vm1660_vm7, %v1659_v12, %v1657_v27  ;;  %v1674_v2 = vadd.s32 4294967248, %v3431_v50 }
 0x234   :  { %1556 = vst [vmem:[#allocation1 + $0x7] ss:$9 sm:$0xff] %v1327_v40  ;;  %v3422_v48 = vpop.permute.xlu0 %1607  ;;  %v3450_v40 = vadd.s32 4294967240, %v3431_v50  ;;  %v1665_v42 = vsel %vm1664_vm8, %v1663_v38, %v1661_v45 }
 0x235   :  { %v1669_v10 = vsel %vm1668_vm9, %v1667_v9, %v1665_v42 }
 0x239   :  { %v3418_v28 = vpop.permute.xlu2 %1601 }
 0x23b   :  { %v1557_v20 = vld [vmem:[#allocation1] sm:$0xff] }
 0x23c   :  { %1643 = vperm.xlu0 %1764, %v1557_v20   ;;  %1558 = vst [vmem:[#allocation1] ss:$9 sm:$0xff] %v1328_v57  ;;  %v3428_v13 = vpop.permute.xlu0 %1616  ;;  %v1675_v57 = vperm.slane %v1596_v49, %v1674_v2  ;;  %v1686_v20 = vadd.s32 4294967224, %v3431_v50 }
 0x23d   :  { %1559 = vst [vmem:[#allocation1 + $0x1] ss:$9 sm:$0xff] %v1329_v51  ;;  %v1679_v51 = vperm.slane %v1599_v33, %v3450_v40 }
 0x23e   :  { %1560 = vst [vmem:[#allocation1 + $0x2] ss:$9 sm:$0xff] %v1330_v14 }
 0x23f   :  { %1561 = vst [vmem:[#allocation1 + $0x3] ss:$9 sm:$0xff] %v1331_v55  ;;  %v1673_v55 = vsel %vm1672_vm10, %v1671_v19, %v1669_v10 }
 0x240   :  { %1562 = vst [vmem:[#allocation1 + $0x4] ss:$9 sm:$0xff] %v1332_v61  ;;  %v1677_v1 = vsel %vm1676_vm11, %v1675_v57, %v1673_v55 }
 0x241   :  { %1563 = vst [vmem:[#allocation1 + $0x5] ss:$9 sm:$0xff] %v1333_v26  ;;  %v3424_v31 = vpop.permute.xlu2 %1610  ;;  %v1683_v26 = vperm.slane %v3418_v28, %v3455_v22  ;;  %v1710_v28 = vadd.s32 4294967176, %v3431_v50 }
 0x242   :  { %1564 = vst [vmem:[#allocation1 + $0x6] ss:$9 sm:$0xff] %v1334_v37  ;;  %v1695_v62 = vperm.slane %v3424_v31, %v1694_v17 }
 0x243   :  { %1565 = vst [vmem:[#allocation1 + $0x7] ss:$9 sm:$0xff] %v1335_v34  ;;  %v1681_v34 = vsel %vm1680_vm12, %v1679_v51, %v1677_v1 }
 0x245   :  { %v3436_v32 = vpop.permute.xlu1 %1622 }
 0x249   :  { %v3434_v21 = vpop.permute.xlu2 %1619 }
 0x24a   :  { %v1566_v35 = vld [vmem:[#allocation1] sm:$0xff] }
 0x24b   :  { %1646 = vperm.xlu2 %1766, %v1566_v35   ;;  %1567 = vst [vmem:[#allocation1] ss:$9 sm:$0xff] %v1336_v60  ;;  %v1687_v60 = vperm.slane %v3420_v58, %v1686_v20  ;;  %v1691_v35 = vperm.slane %v3422_v48, %v1690_v29 }
 0x24c   :  { %1568 = vst [vmem:[#allocation1 + $0x1] ss:$9 sm:$0xff] %v1337_v23 }
 0x24d   :  { %1569 = vst [vmem:[#allocation1 + $0x2] ss:$9 sm:$0xff] %v1338_v46  ;;  %v1698_v46 = vadd.s32 4294967200, %v3431_v50 }
 0x24e   :  { %1570 = vst [vmem:[#allocation1 + $0x3] ss:$9 sm:$0xff] %v1339_v54 }
 0x24f   :  { %1571 = vst [vmem:[#allocation1 + $0x4] ss:$9 sm:$0xff] %v1340_v41  ;;  %v1699_v49 = vperm.slane %v3426_v47, %v1698_v46 }
 0x250   :  { %1572 = vst [vmem:[#allocation1 + $0x5] ss:$9 sm:$0xff] %v1341_v53  ;;  %v1702_v53 = vadd.s32 4294967192, %v3431_v50 }
 0x251   :  { %1573 = vst [vmem:[#allocation1 + $0x6] ss:$9 sm:$0xff] %v1342_v5  ;;  %v1629_v8 = vpop.permute.xlu2 %1628 }
 0x252   :  { %1574 = vst [vmem:[#allocation1 + $0x7] ss:$9 sm:$0xff] %v1343_v52  ;;  %v1715_v37 = vperm.slane %v1629_v8, %v1654_v30  ;;  %v1685_v52 = vsel %vm1684_vm13, %v1683_v26, %v1681_v34  ;;  %v1703_v33 = vperm.slane %v3428_v13, %v1702_v53  ;;  %v1706_v30 = vadd.s32 4294967184, %v3431_v50 }
 0x253   :  { %v1689_v25 = vsel %vm1688_vm14, %v1687_v60, %v1685_v52  ;;  %v1711_v13 = vperm.slane %v3436_v32, %v1710_v28 }
 0x254   :  { %v1626_v63 = vpop.permute.xlu0 %1625  ;;  %v1693_v15 = vsel %vm1692_vm15, %v1691_v35, %v1689_v25  ;;  %v1707_v27 = vperm.slane %v3434_v21, %v1706_v30 }
 0x255   :  { %v1714_v14 = vperm.slane %v1626_v63, %v3431_v50 }
 0x257   :  { %v1716_v54 = vsel %vm1656_vm6, %v1715_v37, %v1714_v14  ;;  %vm1737_vm6 = vcmp.lt.s32.totalorder %v1651_v16, 200 }
 0x259   :  { %v1575_v59 = vld [vmem:[#allocation1] sm:$0xff] }
 0x25a   :  { %1649 = vperm.xlu1 %1765, %v1575_v59  }
 0x272   :  { %v1632_v56 = vpop.permute.xlu1 %1631 }
 0x273   :  { %v1717_v61 = vperm.slane %v1632_v56, %v1658_v24  ;;  %v1697_v24 = vsel %vm1696_vm0, %v1695_v62, %v1693_v15 }
 0x274   :  { %v1701_v63 = vsel %vm1700_vm1, %v1699_v49, %v1697_v24 }
 0x275   :  { %v1718_v5 = vsel %vm1660_vm7, %v1717_v61, %v1716_v54 }
 0x278   :  { %v1638_v11 = vpop.permute.xlu2 %1637 }
 0x279   :  { %v1721_v4 = vperm.slane %v1638_v11, %v3441_v39  ;;  %v1705_v39 = vsel %vm1704_vm2, %v1703_v33, %v1701_v63 }
 0x27a   :  { %v1709_v8 = vsel %vm1708_vm3, %v1707_v27, %v1705_v39 }
 0x27b   :  { %v1713_v32 = vsel %vm1712_vm4, %v1711_v13, %v1709_v8 }
 0x281   :  { %v1635_v44 = vpop.permute.xlu0 %1634 }
 0x282   :  { %v1719_v3 = vperm.slane %v1635_v44, %v1662_v0 }
 0x284   :  { %v1720_v59 = vsel %vm1664_vm8, %v1719_v3, %v1718_v5 }
 0x285   :  { %v1722_v48 = vsel %vm1668_vm9, %v1721_v4, %v1720_v59 }
 0x29f   :  { %v1641_v23 = vpop.permute.xlu1 %1640 }
 0x2a0   :  { %v1723_v18 = vperm.slane %v1641_v23, %v1670_v6 }
 0x2a2   :  { %v1724_v36 = vsel %vm1672_vm10, %v1723_v18, %v1722_v48 }
 0x2a5   :  { %v1647_v58 = vpop.permute.xlu2 %1646 }
 0x2a6   :  { %v1727_v7 = vperm.slane %v1647_v58, %v3450_v40 }
 0x2ae   :  { %v1644_v41 = vpop.permute.xlu0 %1643 }
 0x2af   :  { %v1725_v43 = vperm.slane %v1644_v41, %v1674_v2 }
 0x2b1   :  { %v1726_v31 = vsel %vm1676_vm11, %v1725_v43, %v1724_v36 }
 0x2b2   :  { %v1728_v50 = vsel %vm1680_vm12, %v1727_v7, %v1726_v31 }
 0x2cc   :  { %v1650_v47 = vpop.permute.xlu1 %1649 }
 0x2cd   :  { %v1729_v0 = vperm.slane %v1650_v47, %v3455_v22 }
 0x2cf   :  { %v1730_v12 = vsel %vm1684_vm13, %v1729_v0, %v1728_v50 }
 0x2d0   :  { %v1731_v45 = vrot.slane %v1730_v12, 7 }
 0x2d2   :  { %v1733_v21 = vsel %vm1732_vm5, %v1713_v32, %v1731_v45 }
 0x2d3   :  { %1739 = vst.msk [vmem:[#allocation10] sm:$0x3] %vm1737_vm6, %v1733_v21 }
 0x2d4   :  { %1750 = dma.vmem_to_hbm [thread:$0]  %s1746_s1, 32, %s1748_s23, [#allocation7]  }
 0x2d5   :  { %1943 = dma.done.wait [#allocation7], 32  }
 0x2d6   :  { %1944 = vsyncadd [#allocation7], 4294967264 }
 0x2d7   :  { %1755 = vsyncpa [#allocation6], 1 }
 0x2d8   :  { %1756 = vsyncpa [#allocation9], 1 }
 0x2d9   :  { %1757 = vsyncpa [#allocation7], 1 }

</bundles_post_ra>
